<compile_context>
chip_gen: v5e
topology: v5e:2x2
jax: 0.10.0
libtpu: 0.0.40
codegen_flags: <defaults>
</compile_context>

<pallas_src>
import functools

import jax
import jax.numpy as jnp
from jax.experimental import pallas as pl
from jax.experimental.pallas import tpu as pltpu


def peloss_kernel(xp_ref, yp_ref, rgb_ref, out_ref, *, H, W, C):
    # xp_ref : (1, C, H+2, W+2) reflection-padded pred   (this batch element)
    # yp_ref : (1, C, H+2, W+2) reflection-padded target
    # rgb_ref: (1, Crgb, H, W)  rgb image (this batch element)
    # out_ref: (1, 8, 128)      raw sums: row0=ssim, row1=|y-x|, row2=gdx_w, row3=gdy_w

    # Edge-aware smoothness weights depend only on rgb: compute once per batch
    # element and reuse for every channel in the loop below.
    r = rgb_ref[0].astype(jnp.float32)                               # (Crgb, H, W)
    gix = jnp.mean(jnp.abs(r[:, :, :-1] - r[:, :, 1:]), axis=0)      # (H, W-1)
    giy = jnp.mean(jnp.abs(r[:, :-1, :] - r[:, 1:, :]), axis=0)      # (H-1, W)
    wx = jnp.exp(-gix)
    wy = jnp.exp(-giy)

    # Raw-sum formulation: SSIM numerator/denominator both scaled by 81**2,
    # so the ratio (and the loss) is identical to the /9 mean formulation.
    C1_81 = 81.0 * (0.01 ** 2)
    C2_81 = 81.0 * (0.03 ** 2)

    def pool3_raw(zp):
        # Separable 3x3 stride-1 raw-sum pool of an already padded (H+2, W+2)
        # map: vertical (sublane) 3-tap, then horizontal (lane) 3-tap.
        v = zp[0:H, :] + zp[1:H + 1, :] + zp[2:H + 2, :]             # (H, W+2)
        return v[:, 0:W] + v[:, 1:W + 1] + v[:, 2:W + 2]             # (H, W)

    s_ssim = 0.0
    s_abs = 0.0
    s_gdx = 0.0
    s_gdy = 0.0
    for c in range(C):   # static, unrolled; C is small
        xp = xp_ref[0, c].astype(jnp.float32)   # (H+2, W+2)
        yp = yp_ref[0, c].astype(jnp.float32)   # (H+2, W+2)
        x = xp[1:1 + H, 1:1 + W]                # pred, unpadded center
        y = yp[1:1 + H, 1:1 + W]                # target, unpadded center

        # ---- SSIM(pred, target), raw-sum scaled ----
        Sx = pool3_raw(xp)            # 9 * mu_x
        Sy = pool3_raw(yp)            # 9 * mu_y
        Pxx = pool3_raw(xp * xp)      # 9 * pool(x^2)
        Pyy = pool3_raw(yp * yp)
        Pxy = pool3_raw(xp * yp)

        A = Sx * Sy                   # 81 * mu_x * mu_y
        Bx = Sx * Sx                  # 81 * mu_x^2
        By = Sy * Sy
        sxy81 = 9.0 * Pxy - A         # 81 * sigma_xy
        sx81 = 9.0 * Pxx - Bx         # 81 * sigma_x
        sy81 = 9.0 * Pyy - By         # 81 * sigma_y

        ssim_n = (A + A + C1_81) * (sxy81 + sxy81 + C2_81)
        ssim_d = (Bx + By + C1_81) * (sx81 + sy81 + C2_81)
        # Divide on the EUP: approximate reciprocal + one Newton refinement step.
        rinv = pl.reciprocal(ssim_d, approx=True)
        rinv = rinv * (2.0 - ssim_d * rinv)
        ssim = jnp.clip((1.0 - ssim_n * rinv) * 0.5, 0.0, 1.0)

        # ---- raw reductions (a / (1-a) weighting and means done in JAX) ----
        s_ssim = s_ssim + jnp.sum(ssim)
        s_abs = s_abs + jnp.sum(jnp.abs(y - x))

        # ---- edge-aware smoothness (raw sums) ----
        s_gdx = s_gdx + jnp.sum(jnp.abs(x[:, :-1] - x[:, 1:]) * wx)
        s_gdy = s_gdy + jnp.sum(jnp.abs(x[:-1, :] - x[1:, :]) * wy)

    # Lane-dense output block: sums in rows 0..3, lane 0 read back in JAX.
    srow = jax.lax.broadcasted_iota(jnp.int32, (8, 128), 0)
    out_ref[0] = jnp.where(
        srow == 0, s_ssim,
        jnp.where(srow == 1, s_abs,
                  jnp.where(srow == 2, s_gdx,
                            jnp.where(srow == 3, s_gdy, 0.0))))


def pe_loss(target, pred, rgb, a=0.85, l=0.05):
    B, C, H, W = pred.shape
    Crgb = rgb.shape[1]
    Hp, Wp = H + 2, W + 2

    # Reflection pad (pure data movement) stays in JAX; hot path is the kernel.
    pred_p = jnp.pad(pred, ((0, 0), (0, 0), (1, 1), (1, 1)), mode="reflect")
    target_p = jnp.pad(target, ((0, 0), (0, 0), (1, 1), (1, 1)), mode="reflect")

    # Per-step VMEM footprint (double-buffered inputs/output + temporaries
    # headroom), with a margin; clamped to [32 MiB, 64 MiB] (<= physical on all
    # of v5e/v6e/v7x).
    per_step_bytes = 4 * (
        2 * 2 * C * Hp * Wp       # pred + target blocks, double-buffered
        + 2 * Crgb * H * W        # rgb block, double-buffered
        + 2 * 8 * 128             # output block
        + 16 * H * W              # elementwise / pooled temporaries headroom
    )
    vmem_limit = int(min(64 * 1024 * 1024,
                         max(32 * 1024 * 1024, 4 * per_step_bytes)))

    partial_sums = pl.pallas_call(
        functools.partial(peloss_kernel, H=H, W=W, C=C),
        out_shape=jax.ShapeDtypeStruct((B, 8, 128), jnp.float32),
        grid_spec=pltpu.PrefetchScalarGridSpec(
            num_scalar_prefetch=0,
            grid=(B,),
            in_specs=[
                pl.BlockSpec((1, C, Hp, Wp), lambda b: (b, 0, 0, 0)),
                pl.BlockSpec((1, C, Hp, Wp), lambda b: (b, 0, 0, 0)),
                pl.BlockSpec((1, Crgb, H, W), lambda b: (b, 0, 0, 0)),
            ],
            out_specs=pl.BlockSpec((1, 8, 128), lambda b: (b, 0, 0)),
        ),
        compiler_params=pltpu.CompilerParams(
            dimension_semantics=("parallel",),
            vmem_limit_bytes=vmem_limit,
        ),
    )(pred_p, target_p, rgb)

    # Global means from raw sums with the correct (static) element counts;
    # a / (1-a) weighting applied to the two scalar sums here.
    s_ssim = jnp.sum(partial_sums[:, 0, 0])
    s_abs = jnp.sum(partial_sums[:, 1, 0])
    s_gdx = jnp.sum(partial_sums[:, 2, 0])
    s_gdy = jnp.sum(partial_sums[:, 3, 0])
    n_pe = B * C * H * W
    n_gx = B * C * H * (W - 1)
    n_gy = B * C * (H - 1) * W
    pe = (a * s_ssim + (1.0 - a) * s_abs) / n_pe
    smooth = s_gdx / n_gx + s_gdy / n_gy
    return pe + l * smooth


def pe_loss_ref(target, pred, rgb, a=0.85, l=0.05):
    """Pure-JAX reference mirroring the PyTorch module."""
    def pool(z):
        zp = jnp.pad(z, ((0, 0), (0, 0), (1, 1), (1, 1)), mode="reflect")
        H, W = z.shape[2], z.shape[3]
        acc = sum(zp[:, :, di:di + H, dj:dj + W] for di in range(3) for dj in range(3))
        return acc / 9.0

    x, y = pred, target
    mu_x, mu_y = pool(x), pool(y)
    sig_x = pool(x * x) - mu_x ** 2
    sig_y = pool(y * y) - mu_y ** 2
    sig_xy = pool(x * y) - mu_x * mu_y
    C1, C2 = 0.01 ** 2, 0.03 ** 2
    n = (2 * mu_x * mu_y + C1) * (2 * sig_xy + C2)
    d = (mu_x ** 2 + mu_y ** 2 + C1) * (sig_x + sig_y + C2)
    ssim = jnp.clip((1 - n / d) / 2, 0.0, 1.0)

    abs_diff = jnp.abs(target - pred)
    pe = jnp.mean(a * ssim + (1 - a) * abs_diff)

    gdx = jnp.abs(pred[:, :, :, :-1] - pred[:, :, :, 1:])
    gdy = jnp.abs(pred[:, :, :-1, :] - pred[:, :, 1:, :])
    gix = jnp.mean(jnp.abs(rgb[:, :, :, :-1] - rgb[:, :, :, 1:]), axis=1, keepdims=True)
    giy = jnp.mean(jnp.abs(rgb[:, :, :-1, :] - rgb[:, :, 1:, :]), axis=1, keepdims=True)
    smooth = jnp.mean(gdx * jnp.exp(-gix)) + jnp.mean(gdy * jnp.exp(-giy))
    return pe + l * smooth


if __name__ == "__main__":
    key = jax.random.PRNGKey(0)
    k1, k2, k3 = jax.random.split(key, 3)
    B, C, H, W = 2, 3, 16, 16
    target = jax.random.uniform(k1, (B, C, H, W), dtype=jnp.float32)
    pred = jax.random.uniform(k2, (B, C, H, W), dtype=jnp.float32)
    rgb = jax.random.uniform(k3, (B, C, H, W), dtype=jnp.float32)

    out = jax.block_until_ready(pe_loss(target, pred, rgb))
    ref = jax.block_until_ready(pe_loss_ref(target, pred, rgb))
    # 1e-4 tolerance: approx reciprocal + 1 Newton step on the (rescaled) SSIM
    # denominator; raw-sum rescaling only perturbs f32 rounding.
    assert jnp.allclose(out, ref, rtol=1e-4, atol=1e-4), (out, ref)
    print("KERNEL_OK")
</pallas_src>

<mosaic_0001>
module attributes {stable_mosaic.version = 11 : i64} {
  func.func @peloss_kernel(%arg0: i32, %arg1: memref<1x3x18x18xf32, #tpu.memory_space<vmem>>, %arg2: memref<1x3x18x18xf32, #tpu.memory_space<vmem>>, %arg3: memref<1x3x16x16xf32, #tpu.memory_space<vmem>>, %arg4: memref<1x8x128xf32, #tpu.memory_space<vmem>>) attributes {dimension_semantics = [#tpu.dimension_semantics<parallel>], iteration_bounds = array<i64: 2>, scalar_prefetch = 0 : i64, scratch_operands = 0 : i64, tpu.core_type = #tpu.core_type<tc>, window_params = [{transform_indices = @transform_0, window_bounds = array<i64: 1, 3, 18, 18>}, {transform_indices = @transform_1, window_bounds = array<i64: 1, 3, 18, 18>}, {transform_indices = @transform_2, window_bounds = array<i64: 1, 3, 16, 16>}, {transform_indices = @transform_3, window_bounds = array<i64: 1, 8, 128>}]} {
    %c0 = arith.constant 0 : index
    %c0_0 = arith.constant 0 : index
    %c0_1 = arith.constant 0 : index
    %c0_2 = arith.constant 0 : index
    %0 = vector.load %arg3[%c0, %c0_0, %c0_1, %c0_2] : memref<1x3x16x16xf32, #tpu.memory_space<vmem>>, vector<1x3x16x16xf32>
    %1 = vector.shape_cast %0 : vector<1x3x16x16xf32> to vector<3x16x16xf32>
    %2 = vector.extract_strided_slice %1 {offsets = [0, 0, 0], sizes = [3, 16, 15], strides = [1, 1, 1]} : vector<3x16x16xf32> to vector<3x16x15xf32>
    %3 = vector.extract_strided_slice %1 {offsets = [0, 0, 1], sizes = [3, 16, 15], strides = [1, 1, 1]} : vector<3x16x16xf32> to vector<3x16x15xf32>
    %4 = arith.subf %2, %3 : vector<3x16x15xf32>
    %5 = math.absf %4 : vector<3x16x15xf32>
    %cst = arith.constant dense<0.000000e+00> : vector<16x15xf32>
    %6 = vector.multi_reduction <add>, %5, %cst [0] : vector<3x16x15xf32> to vector<16x15xf32>
    %cst_3 = arith.constant 3.000000e+00 : f32
    %7 = vector.broadcast %cst_3 : f32 to vector<16x15xf32>
    %8 = arith.divf %6, %7 : vector<16x15xf32>
    %9 = vector.extract_strided_slice %1 {offsets = [0, 0, 0], sizes = [3, 15, 16], strides = [1, 1, 1]} : vector<3x16x16xf32> to vector<3x15x16xf32>
    %10 = vector.extract_strided_slice %1 {offsets = [0, 1, 0], sizes = [3, 15, 16], strides = [1, 1, 1]} : vector<3x16x16xf32> to vector<3x15x16xf32>
    %11 = arith.subf %9, %10 : vector<3x15x16xf32>
    %12 = math.absf %11 : vector<3x15x16xf32>
    %cst_4 = arith.constant dense<0.000000e+00> : vector<15x16xf32>
    %13 = vector.multi_reduction <add>, %12, %cst_4 [0] : vector<3x15x16xf32> to vector<15x16xf32>
    %cst_5 = arith.constant 3.000000e+00 : f32
    %14 = vector.broadcast %cst_5 : f32 to vector<15x16xf32>
    %15 = arith.divf %13, %14 : vector<15x16xf32>
    %cst_6 = arith.constant 0.000000e+00 : f32
    %16 = vector.broadcast %cst_6 : f32 to vector<16x15xf32>
    %17 = arith.subf %16, %8 : vector<16x15xf32>
    %18 = math.exp %17 : vector<16x15xf32>
    %cst_7 = arith.constant 0.000000e+00 : f32
    %19 = vector.broadcast %cst_7 : f32 to vector<15x16xf32>
    %20 = arith.subf %19, %15 : vector<15x16xf32>
    %21 = math.exp %20 : vector<15x16xf32>
    %c0_8 = arith.constant 0 : index
    %c0_9 = arith.constant 0 : index
    %c0_10 = arith.constant 0 : index
    %c0_11 = arith.constant 0 : index
    %22 = vector.load %arg1[%c0_8, %c0_9, %c0_10, %c0_11] : memref<1x3x18x18xf32, #tpu.memory_space<vmem>>, vector<1x1x18x18xf32>
    %23 = vector.shape_cast %22 : vector<1x1x18x18xf32> to vector<18x18xf32>
    %c0_12 = arith.constant 0 : index
    %c0_13 = arith.constant 0 : index
    %c0_14 = arith.constant 0 : index
    %c0_15 = arith.constant 0 : index
    %24 = vector.load %arg2[%c0_12, %c0_13, %c0_14, %c0_15] : memref<1x3x18x18xf32, #tpu.memory_space<vmem>>, vector<1x1x18x18xf32>
    %25 = vector.shape_cast %24 : vector<1x1x18x18xf32> to vector<18x18xf32>
    %26 = vector.extract_strided_slice %23 {offsets = [1, 1], sizes = [16, 16], strides = [1, 1]} : vector<18x18xf32> to vector<16x16xf32>
    %27 = vector.extract_strided_slice %25 {offsets = [1, 1], sizes = [16, 16], strides = [1, 1]} : vector<18x18xf32> to vector<16x16xf32>
    %28 = vector.extract_strided_slice %23 {offsets = [0, 0], sizes = [16, 18], strides = [1, 1]} : vector<18x18xf32> to vector<16x18xf32>
    %29 = vector.extract_strided_slice %23 {offsets = [1, 0], sizes = [16, 18], strides = [1, 1]} : vector<18x18xf32> to vector<16x18xf32>
    %30 = arith.addf %28, %29 : vector<16x18xf32>
    %31 = vector.extract_strided_slice %23 {offsets = [2, 0], sizes = [16, 18], strides = [1, 1]} : vector<18x18xf32> to vector<16x18xf32>
    %32 = arith.addf %30, %31 : vector<16x18xf32>
    %33 = vector.extract_strided_slice %32 {offsets = [0, 0], sizes = [16, 16], strides = [1, 1]} : vector<16x18xf32> to vector<16x16xf32>
    %34 = vector.extract_strided_slice %32 {offsets = [0, 1], sizes = [16, 16], strides = [1, 1]} : vector<16x18xf32> to vector<16x16xf32>
    %35 = arith.addf %33, %34 : vector<16x16xf32>
    %36 = vector.extract_strided_slice %32 {offsets = [0, 2], sizes = [16, 16], strides = [1, 1]} : vector<16x18xf32> to vector<16x16xf32>
    %37 = arith.addf %35, %36 : vector<16x16xf32>
    %38 = vector.extract_strided_slice %25 {offsets = [0, 0], sizes = [16, 18], strides = [1, 1]} : vector<18x18xf32> to vector<16x18xf32>
    %39 = vector.extract_strided_slice %25 {offsets = [1, 0], sizes = [16, 18], strides = [1, 1]} : vector<18x18xf32> to vector<16x18xf32>
    %40 = arith.addf %38, %39 : vector<16x18xf32>
    %41 = vector.extract_strided_slice %25 {offsets = [2, 0], sizes = [16, 18], strides = [1, 1]} : vector<18x18xf32> to vector<16x18xf32>
    %42 = arith.addf %40, %41 : vector<16x18xf32>
    %43 = vector.extract_strided_slice %42 {offsets = [0, 0], sizes = [16, 16], strides = [1, 1]} : vector<16x18xf32> to vector<16x16xf32>
    %44 = vector.extract_strided_slice %42 {offsets = [0, 1], sizes = [16, 16], strides = [1, 1]} : vector<16x18xf32> to vector<16x16xf32>
    %45 = arith.addf %43, %44 : vector<16x16xf32>
    %46 = vector.extract_strided_slice %42 {offsets = [0, 2], sizes = [16, 16], strides = [1, 1]} : vector<16x18xf32> to vector<16x16xf32>
    %47 = arith.addf %45, %46 : vector<16x16xf32>
    %48 = arith.mulf %23, %23 : vector<18x18xf32>
    %49 = vector.extract_strided_slice %48 {offsets = [0, 0], sizes = [16, 18], strides = [1, 1]} : vector<18x18xf32> to vector<16x18xf32>
    %50 = vector.extract_strided_slice %48 {offsets = [1, 0], sizes = [16, 18], strides = [1, 1]} : vector<18x18xf32> to vector<16x18xf32>
    %51 = arith.addf %49, %50 : vector<16x18xf32>
    %52 = vector.extract_strided_slice %48 {offsets = [2, 0], sizes = [16, 18], strides = [1, 1]} : vector<18x18xf32> to vector<16x18xf32>
    %53 = arith.addf %51, %52 : vector<16x18xf32>
    %54 = vector.extract_strided_slice %53 {offsets = [0, 0], sizes = [16, 16], strides = [1, 1]} : vector<16x18xf32> to vector<16x16xf32>
    %55 = vector.extract_strided_slice %53 {offsets = [0, 1], sizes = [16, 16], strides = [1, 1]} : vector<16x18xf32> to vector<16x16xf32>
    %56 = arith.addf %54, %55 : vector<16x16xf32>
    %57 = vector.extract_strided_slice %53 {offsets = [0, 2], sizes = [16, 16], strides = [1, 1]} : vector<16x18xf32> to vector<16x16xf32>
    %58 = arith.addf %56, %57 : vector<16x16xf32>
    %59 = arith.mulf %25, %25 : vector<18x18xf32>
    %60 = vector.extract_strided_slice %59 {offsets = [0, 0], sizes = [16, 18], strides = [1, 1]} : vector<18x18xf32> to vector<16x18xf32>
    %61 = vector.extract_strided_slice %59 {offsets = [1, 0], sizes = [16, 18], strides = [1, 1]} : vector<18x18xf32> to vector<16x18xf32>
    %62 = arith.addf %60, %61 : vector<16x18xf32>
    %63 = vector.extract_strided_slice %59 {offsets = [2, 0], sizes = [16, 18], strides = [1, 1]} : vector<18x18xf32> to vector<16x18xf32>
    %64 = arith.addf %62, %63 : vector<16x18xf32>
    %65 = vector.extract_strided_slice %64 {offsets = [0, 0], sizes = [16, 16], strides = [1, 1]} : vector<16x18xf32> to vector<16x16xf32>
    %66 = vector.extract_strided_slice %64 {offsets = [0, 1], sizes = [16, 16], strides = [1, 1]} : vector<16x18xf32> to vector<16x16xf32>
    %67 = arith.addf %65, %66 : vector<16x16xf32>
    %68 = vector.extract_strided_slice %64 {offsets = [0, 2], sizes = [16, 16], strides = [1, 1]} : vector<16x18xf32> to vector<16x16xf32>
    %69 = arith.addf %67, %68 : vector<16x16xf32>
    %70 = arith.mulf %23, %25 : vector<18x18xf32>
    %71 = vector.extract_strided_slice %70 {offsets = [0, 0], sizes = [16, 18], strides = [1, 1]} : vector<18x18xf32> to vector<16x18xf32>
    %72 = vector.extract_strided_slice %70 {offsets = [1, 0], sizes = [16, 18], strides = [1, 1]} : vector<18x18xf32> to vector<16x18xf32>
    %73 = arith.addf %71, %72 : vector<16x18xf32>
    %74 = vector.extract_strided_slice %70 {offsets = [2, 0], sizes = [16, 18], strides = [1, 1]} : vector<18x18xf32> to vector<16x18xf32>
    %75 = arith.addf %73, %74 : vector<16x18xf32>
    %76 = vector.extract_strided_slice %75 {offsets = [0, 0], sizes = [16, 16], strides = [1, 1]} : vector<16x18xf32> to vector<16x16xf32>
    %77 = vector.extract_strided_slice %75 {offsets = [0, 1], sizes = [16, 16], strides = [1, 1]} : vector<16x18xf32> to vector<16x16xf32>
    %78 = arith.addf %76, %77 : vector<16x16xf32>
    %79 = vector.extract_strided_slice %75 {offsets = [0, 2], sizes = [16, 16], strides = [1, 1]} : vector<16x18xf32> to vector<16x16xf32>
    %80 = arith.addf %78, %79 : vector<16x16xf32>
    %81 = arith.mulf %37, %47 : vector<16x16xf32>
    %82 = arith.mulf %37, %37 : vector<16x16xf32>
    %83 = arith.mulf %47, %47 : vector<16x16xf32>
    %cst_16 = arith.constant 9.000000e+00 : f32
    %84 = vector.broadcast %cst_16 : f32 to vector<16x16xf32>
    %85 = arith.mulf %84, %80 : vector<16x16xf32>
    %86 = arith.subf %85, %81 : vector<16x16xf32>
    %cst_17 = arith.constant 9.000000e+00 : f32
    %87 = vector.broadcast %cst_17 : f32 to vector<16x16xf32>
    %88 = arith.mulf %87, %58 : vector<16x16xf32>
    %89 = arith.subf %88, %82 : vector<16x16xf32>
    %cst_18 = arith.constant 9.000000e+00 : f32
    %90 = vector.broadcast %cst_18 : f32 to vector<16x16xf32>
    %91 = arith.mulf %90, %69 : vector<16x16xf32>
    %92 = arith.subf %91, %83 : vector<16x16xf32>
    %93 = arith.addf %81, %81 : vector<16x16xf32>
    %cst_19 = arith.constant 8.100000e-03 : f32
    %94 = vector.broadcast %cst_19 : f32 to vector<16x16xf32>
    %95 = arith.addf %93, %94 : vector<16x16xf32>
    %96 = arith.addf %86, %86 : vector<16x16xf32>
    %cst_20 = arith.constant 7.290000e-02 : f32
    %97 = vector.broadcast %cst_20 : f32 to vector<16x16xf32>
    %98 = arith.addf %96, %97 : vector<16x16xf32>
    %99 = arith.mulf %95, %98 : vector<16x16xf32>
    %100 = arith.addf %82, %83 : vector<16x16xf32>
    %cst_21 = arith.constant 8.100000e-03 : f32
    %101 = vector.broadcast %cst_21 : f32 to vector<16x16xf32>
    %102 = arith.addf %100, %101 : vector<16x16xf32>
    %103 = arith.addf %89, %92 : vector<16x16xf32>
    %cst_22 = arith.constant 7.290000e-02 : f32
    %104 = vector.broadcast %cst_22 : f32 to vector<16x16xf32>
    %105 = arith.addf %103, %104 : vector<16x16xf32>
    %106 = arith.mulf %102, %105 : vector<16x16xf32>
    %107 = tpu.reciprocal %106 {approx = true} : vector<16x16xf32> -> vector<16x16xf32>
    %108 = arith.mulf %106, %107 : vector<16x16xf32>
    %cst_23 = arith.constant 2.000000e+00 : f32
    %109 = vector.broadcast %cst_23 : f32 to vector<16x16xf32>
    %110 = arith.subf %109, %108 : vector<16x16xf32>
    %111 = arith.mulf %107, %110 : vector<16x16xf32>
    %112 = arith.mulf %99, %111 : vector<16x16xf32>
    %cst_24 = arith.constant 1.000000e+00 : f32
    %113 = vector.broadcast %cst_24 : f32 to vector<16x16xf32>
    %114 = arith.subf %113, %112 : vector<16x16xf32>
    %cst_25 = arith.constant 5.000000e-01 : f32
    %115 = vector.broadcast %cst_25 : f32 to vector<16x16xf32>
    %116 = arith.mulf %114, %115 : vector<16x16xf32>
    %cst_26 = arith.constant 0.000000e+00 : f32
    %cst_27 = arith.constant 1.000000e+00 : f32
    %117 = vector.broadcast %cst_26 : f32 to vector<16x16xf32>
    %118 = arith.maximumf %117, %116 : vector<16x16xf32>
    %119 = vector.broadcast %cst_27 : f32 to vector<16x16xf32>
    %120 = arith.minimumf %119, %118 : vector<16x16xf32>
    %121 = vector.shape_cast %120 : vector<16x16xf32> to vector<1x16x16xf32>
    %cst_28 = arith.constant dense<0.000000e+00> : vector<1xf32>
    %122 = vector.multi_reduction <add>, %121, %cst_28 [1, 2] : vector<1x16x16xf32> to vector<1xf32>
    %123 = vector.shape_cast %122 : vector<1xf32> to vector<1x1x1xf32>
    %124 = vector.extract %123[0, 0, 0] : f32 from vector<1x1x1xf32>
    %cst_29 = arith.constant 0.000000e+00 : f32
    %125 = arith.addf %cst_29, %124 : f32
    %126 = arith.subf %27, %26 : vector<16x16xf32>
    %127 = math.absf %126 : vector<16x16xf32>
    %128 = vector.shape_cast %127 : vector<16x16xf32> to vector<1x16x16xf32>
    %cst_30 = arith.constant dense<0.000000e+00> : vector<1xf32>
    %129 = vector.multi_reduction <add>, %128, %cst_30 [1, 2] : vector<1x16x16xf32> to vector<1xf32>
    %130 = vector.shape_cast %129 : vector<1xf32> to vector<1x1x1xf32>
    %131 = vector.extract %130[0, 0, 0] : f32 from vector<1x1x1xf32>
    %cst_31 = arith.constant 0.000000e+00 : f32
    %132 = arith.addf %cst_31, %131 : f32
    %133 = vector.extract_strided_slice %26 {offsets = [0, 0], sizes = [16, 15], strides = [1, 1]} : vector<16x16xf32> to vector<16x15xf32>
    %134 = vector.extract_strided_slice %26 {offsets = [0, 1], sizes = [16, 15], strides = [1, 1]} : vector<16x16xf32> to vector<16x15xf32>
    %135 = arith.subf %133, %134 : vector<16x15xf32>
    %136 = math.absf %135 : vector<16x15xf32>
    %137 = arith.mulf %136, %18 : vector<16x15xf32>
    %138 = vector.shape_cast %137 : vector<16x15xf32> to vector<1x16x15xf32>
    %cst_32 = arith.constant dense<0.000000e+00> : vector<1xf32>
    %139 = vector.multi_reduction <add>, %138, %cst_32 [1, 2] : vector<1x16x15xf32> to vector<1xf32>
    %140 = vector.shape_cast %139 : vector<1xf32> to vector<1x1x1xf32>
    %141 = vector.extract %140[0, 0, 0] : f32 from vector<1x1x1xf32>
    %cst_33 = arith.constant 0.000000e+00 : f32
    %142 = arith.addf %cst_33, %141 : f32
    %143 = vector.extract_strided_slice %26 {offsets = [0, 0], sizes = [15, 16], strides = [1, 1]} : vector<16x16xf32> to vector<15x16xf32>
    %144 = vector.extract_strided_slice %26 {offsets = [1, 0], sizes = [15, 16], strides = [1, 1]} : vector<16x16xf32> to vector<15x16xf32>
    %145 = arith.subf %143, %144 : vector<15x16xf32>
    %146 = math.absf %145 : vector<15x16xf32>
    %147 = arith.mulf %146, %21 : vector<15x16xf32>
    %148 = vector.shape_cast %147 : vector<15x16xf32> to vector<1x15x16xf32>
    %cst_34 = arith.constant dense<0.000000e+00> : vector<1xf32>
    %149 = vector.multi_reduction <add>, %148, %cst_34 [1, 2] : vector<1x15x16xf32> to vector<1xf32>
    %150 = vector.shape_cast %149 : vector<1xf32> to vector<1x1x1xf32>
    %151 = vector.extract %150[0, 0, 0] : f32 from vector<1x1x1xf32>
    %cst_35 = arith.constant 0.000000e+00 : f32
    %152 = arith.addf %cst_35, %151 : f32
    %c0_36 = arith.constant 0 : index
    %c1 = arith.constant 1 : index
    %c0_37 = arith.constant 0 : index
    %c0_38 = arith.constant 0 : index
    %153 = vector.load %arg1[%c0_36, %c1, %c0_37, %c0_38] : memref<1x3x18x18xf32, #tpu.memory_space<vmem>>, vector<1x1x18x18xf32>
    %154 = vector.shape_cast %153 : vector<1x1x18x18xf32> to vector<18x18xf32>
    %c0_39 = arith.constant 0 : index
    %c1_40 = arith.constant 1 : index
    %c0_41 = arith.constant 0 : index
    %c0_42 = arith.constant 0 : index
    %155 = vector.load %arg2[%c0_39, %c1_40, %c0_41, %c0_42] : memref<1x3x18x18xf32, #tpu.memory_space<vmem>>, vector<1x1x18x18xf32>
    %156 = vector.shape_cast %155 : vector<1x1x18x18xf32> to vector<18x18xf32>
    %157 = vector.extract_strided_slice %154 {offsets = [1, 1], sizes = [16, 16], strides = [1, 1]} : vector<18x18xf32> to vector<16x16xf32>
    %158 = vector.extract_strided_slice %156 {offsets = [1, 1], sizes = [16, 16], strides = [1, 1]} : vector<18x18xf32> to vector<16x16xf32>
    %159 = vector.extract_strided_slice %154 {offsets = [0, 0], sizes = [16, 18], strides = [1, 1]} : vector<18x18xf32> to vector<16x18xf32>
    %160 = vector.extract_strided_slice %154 {offsets = [1, 0], sizes = [16, 18], strides = [1, 1]} : vector<18x18xf32> to vector<16x18xf32>
    %161 = arith.addf %159, %160 : vector<16x18xf32>
    %162 = vector.extract_strided_slice %154 {offsets = [2, 0], sizes = [16, 18], strides = [1, 1]} : vector<18x18xf32> to vector<16x18xf32>
    %163 = arith.addf %161, %162 : vector<16x18xf32>
    %164 = vector.extract_strided_slice %163 {offsets = [0, 0], sizes = [16, 16], strides = [1, 1]} : vector<16x18xf32> to vector<16x16xf32>
    %165 = vector.extract_strided_slice %163 {offsets = [0, 1], sizes = [16, 16], strides = [1, 1]} : vector<16x18xf32> to vector<16x16xf32>
    %166 = arith.addf %164, %165 : vector<16x16xf32>
    %167 = vector.extract_strided_slice %163 {offsets = [0, 2], sizes = [16, 16], strides = [1, 1]} : vector<16x18xf32> to vector<16x16xf32>
    %168 = arith.addf %166, %167 : vector<16x16xf32>
    %169 = vector.extract_strided_slice %156 {offsets = [0, 0], sizes = [16, 18], strides = [1, 1]} : vector<18x18xf32> to vector<16x18xf32>
    %170 = vector.extract_strided_slice %156 {offsets = [1, 0], sizes = [16, 18], strides = [1, 1]} : vector<18x18xf32> to vector<16x18xf32>
    %171 = arith.addf %169, %170 : vector<16x18xf32>
    %172 = vector.extract_strided_slice %156 {offsets = [2, 0], sizes = [16, 18], strides = [1, 1]} : vector<18x18xf32> to vector<16x18xf32>
    %173 = arith.addf %171, %172 : vector<16x18xf32>
    %174 = vector.extract_strided_slice %173 {offsets = [0, 0], sizes = [16, 16], strides = [1, 1]} : vector<16x18xf32> to vector<16x16xf32>
    %175 = vector.extract_strided_slice %173 {offsets = [0, 1], sizes = [16, 16], strides = [1, 1]} : vector<16x18xf32> to vector<16x16xf32>
    %176 = arith.addf %174, %175 : vector<16x16xf32>
    %177 = vector.extract_strided_slice %173 {offsets = [0, 2], sizes = [16, 16], strides = [1, 1]} : vector<16x18xf32> to vector<16x16xf32>
    %178 = arith.addf %176, %177 : vector<16x16xf32>
    %179 = arith.mulf %154, %154 : vector<18x18xf32>
    %180 = vector.extract_strided_slice %179 {offsets = [0, 0], sizes = [16, 18], strides = [1, 1]} : vector<18x18xf32> to vector<16x18xf32>
    %181 = vector.extract_strided_slice %179 {offsets = [1, 0], sizes = [16, 18], strides = [1, 1]} : vector<18x18xf32> to vector<16x18xf32>
    %182 = arith.addf %180, %181 : vector<16x18xf32>
    %183 = vector.extract_strided_slice %179 {offsets = [2, 0], sizes = [16, 18], strides = [1, 1]} : vector<18x18xf32> to vector<16x18xf32>
    %184 = arith.addf %182, %183 : vector<16x18xf32>
    %185 = vector.extract_strided_slice %184 {offsets = [0, 0], sizes = [16, 16], strides = [1, 1]} : vector<16x18xf32> to vector<16x16xf32>
    %186 = vector.extract_strided_slice %184 {offsets = [0, 1], sizes = [16, 16], strides = [1, 1]} : vector<16x18xf32> to vector<16x16xf32>
    %187 = arith.addf %185, %186 : vector<16x16xf32>
    %188 = vector.extract_strided_slice %184 {offsets = [0, 2], sizes = [16, 16], strides = [1, 1]} : vector<16x18xf32> to vector<16x16xf32>
    %189 = arith.addf %187, %188 : vector<16x16xf32>
    %190 = arith.mulf %156, %156 : vector<18x18xf32>
    %191 = vector.extract_strided_slice %190 {offsets = [0, 0], sizes = [16, 18], strides = [1, 1]} : vector<18x18xf32> to vector<16x18xf32>
    %192 = vector.extract_strided_slice %190 {offsets = [1, 0], sizes = [16, 18], strides = [1, 1]} : vector<18x18xf32> to vector<16x18xf32>
    %193 = arith.addf %191, %192 : vector<16x18xf32>
    %194 = vector.extract_strided_slice %190 {offsets = [2, 0], sizes = [16, 18], strides = [1, 1]} : vector<18x18xf32> to vector<16x18xf32>
    %195 = arith.addf %193, %194 : vector<16x18xf32>
    %196 = vector.extract_strided_slice %195 {offsets = [0, 0], sizes = [16, 16], strides = [1, 1]} : vector<16x18xf32> to vector<16x16xf32>
    %197 = vector.extract_strided_slice %195 {offsets = [0, 1], sizes = [16, 16], strides = [1, 1]} : vector<16x18xf32> to vector<16x16xf32>
    %198 = arith.addf %196, %197 : vector<16x16xf32>
    %199 = vector.extract_strided_slice %195 {offsets = [0, 2], sizes = [16, 16], strides = [1, 1]} : vector<16x18xf32> to vector<16x16xf32>
    %200 = arith.addf %198, %199 : vector<16x16xf32>
    %201 = arith.mulf %154, %156 : vector<18x18xf32>
    %202 = vector.extract_strided_slice %201 {offsets = [0, 0], sizes = [16, 18], strides = [1, 1]} : vector<18x18xf32> to vector<16x18xf32>
    %203 = vector.extract_strided_slice %201 {offsets = [1, 0], sizes = [16, 18], strides = [1, 1]} : vector<18x18xf32> to vector<16x18xf32>
    %204 = arith.addf %202, %203 : vector<16x18xf32>
    %205 = vector.extract_strided_slice %201 {offsets = [2, 0], sizes = [16, 18], strides = [1, 1]} : vector<18x18xf32> to vector<16x18xf32>
    %206 = arith.addf %204, %205 : vector<16x18xf32>
    %207 = vector.extract_strided_slice %206 {offsets = [0, 0], sizes = [16, 16], strides = [1, 1]} : vector<16x18xf32> to vector<16x16xf32>
    %208 = vector.extract_strided_slice %206 {offsets = [0, 1], sizes = [16, 16], strides = [1, 1]} : vector<16x18xf32> to vector<16x16xf32>
    %209 = arith.addf %207, %208 : vector<16x16xf32>
    %210 = vector.extract_strided_slice %206 {offsets = [0, 2], sizes = [16, 16], strides = [1, 1]} : vector<16x18xf32> to vector<16x16xf32>
    %211 = arith.addf %209, %210 : vector<16x16xf32>
    %212 = arith.mulf %168, %178 : vector<16x16xf32>
    %213 = arith.mulf %168, %168 : vector<16x16xf32>
    %214 = arith.mulf %178, %178 : vector<16x16xf32>
    %cst_43 = arith.constant 9.000000e+00 : f32
    %215 = vector.broadcast %cst_43 : f32 to vector<16x16xf32>
    %216 = arith.mulf %215, %211 : vector<16x16xf32>
    %217 = arith.subf %216, %212 : vector<16x16xf32>
    %cst_44 = arith.constant 9.000000e+00 : f32
    %218 = vector.broadcast %cst_44 : f32 to vector<16x16xf32>
    %219 = arith.mulf %218, %189 : vector<16x16xf32>
    %220 = arith.subf %219, %213 : vector<16x16xf32>
    %cst_45 = arith.constant 9.000000e+00 : f32
    %221 = vector.broadcast %cst_45 : f32 to vector<16x16xf32>
    %222 = arith.mulf %221, %200 : vector<16x16xf32>
    %223 = arith.subf %222, %214 : vector<16x16xf32>
    %224 = arith.addf %212, %212 : vector<16x16xf32>
    %cst_46 = arith.constant 8.100000e-03 : f32
    %225 = vector.broadcast %cst_46 : f32 to vector<16x16xf32>
    %226 = arith.addf %224, %225 : vector<16x16xf32>
    %227 = arith.addf %217, %217 : vector<16x16xf32>
    %cst_47 = arith.constant 7.290000e-02 : f32
    %228 = vector.broadcast %cst_47 : f32 to vector<16x16xf32>
    %229 = arith.addf %227, %228 : vector<16x16xf32>
    %230 = arith.mulf %226, %229 : vector<16x16xf32>
    %231 = arith.addf %213, %214 : vector<16x16xf32>
    %cst_48 = arith.constant 8.100000e-03 : f32
    %232 = vector.broadcast %cst_48 : f32 to vector<16x16xf32>
    %233 = arith.addf %231, %232 : vector<16x16xf32>
    %234 = arith.addf %220, %223 : vector<16x16xf32>
    %cst_49 = arith.constant 7.290000e-02 : f32
    %235 = vector.broadcast %cst_49 : f32 to vector<16x16xf32>
    %236 = arith.addf %234, %235 : vector<16x16xf32>
    %237 = arith.mulf %233, %236 : vector<16x16xf32>
    %238 = tpu.reciprocal %237 {approx = true} : vector<16x16xf32> -> vector<16x16xf32>
    %239 = arith.mulf %237, %238 : vector<16x16xf32>
    %cst_50 = arith.constant 2.000000e+00 : f32
    %240 = vector.broadcast %cst_50 : f32 to vector<16x16xf32>
    %241 = arith.subf %240, %239 : vector<16x16xf32>
    %242 = arith.mulf %238, %241 : vector<16x16xf32>
    %243 = arith.mulf %230, %242 : vector<16x16xf32>
    %cst_51 = arith.constant 1.000000e+00 : f32
    %244 = vector.broadcast %cst_51 : f32 to vector<16x16xf32>
    %245 = arith.subf %244, %243 : vector<16x16xf32>
    %cst_52 = arith.constant 5.000000e-01 : f32
    %246 = vector.broadcast %cst_52 : f32 to vector<16x16xf32>
    %247 = arith.mulf %245, %246 : vector<16x16xf32>
    %cst_53 = arith.constant 0.000000e+00 : f32
    %cst_54 = arith.constant 1.000000e+00 : f32
    %248 = vector.broadcast %cst_53 : f32 to vector<16x16xf32>
    %249 = arith.maximumf %248, %247 : vector<16x16xf32>
    %250 = vector.broadcast %cst_54 : f32 to vector<16x16xf32>
    %251 = arith.minimumf %250, %249 : vector<16x16xf32>
    %252 = vector.shape_cast %251 : vector<16x16xf32> to vector<1x16x16xf32>
    %cst_55 = arith.constant dense<0.000000e+00> : vector<1xf32>
    %253 = vector.multi_reduction <add>, %252, %cst_55 [1, 2] : vector<1x16x16xf32> to vector<1xf32>
    %254 = vector.shape_cast %253 : vector<1xf32> to vector<1x1x1xf32>
    %255 = vector.extract %254[0, 0, 0] : f32 from vector<1x1x1xf32>
    %256 = arith.addf %125, %255 : f32
    %257 = arith.subf %158, %157 : vector<16x16xf32>
    %258 = math.absf %257 : vector<16x16xf32>
    %259 = vector.shape_cast %258 : vector<16x16xf32> to vector<1x16x16xf32>
    %cst_56 = arith.constant dense<0.000000e+00> : vector<1xf32>
    %260 = vector.multi_reduction <add>, %259, %cst_56 [1, 2] : vector<1x16x16xf32> to vector<1xf32>
    %261 = vector.shape_cast %260 : vector<1xf32> to vector<1x1x1xf32>
    %262 = vector.extract %261[0, 0, 0] : f32 from vector<1x1x1xf32>
    %263 = arith.addf %132, %262 : f32
    %264 = vector.extract_strided_slice %157 {offsets = [0, 0], sizes = [16, 15], strides = [1, 1]} : vector<16x16xf32> to vector<16x15xf32>
    %265 = vector.extract_strided_slice %157 {offsets = [0, 1], sizes = [16, 15], strides = [1, 1]} : vector<16x16xf32> to vector<16x15xf32>
    %266 = arith.subf %264, %265 : vector<16x15xf32>
    %267 = math.absf %266 : vector<16x15xf32>
    %268 = arith.mulf %267, %18 : vector<16x15xf32>
    %269 = vector.shape_cast %268 : vector<16x15xf32> to vector<1x16x15xf32>
    %cst_57 = arith.constant dense<0.000000e+00> : vector<1xf32>
    %270 = vector.multi_reduction <add>, %269, %cst_57 [1, 2] : vector<1x16x15xf32> to vector<1xf32>
    %271 = vector.shape_cast %270 : vector<1xf32> to vector<1x1x1xf32>
    %272 = vector.extract %271[0, 0, 0] : f32 from vector<1x1x1xf32>
    %273 = arith.addf %142, %272 : f32
    %274 = vector.extract_strided_slice %157 {offsets = [0, 0], sizes = [15, 16], strides = [1, 1]} : vector<16x16xf32> to vector<15x16xf32>
    %275 = vector.extract_strided_slice %157 {offsets = [1, 0], sizes = [15, 16], strides = [1, 1]} : vector<16x16xf32> to vector<15x16xf32>
    %276 = arith.subf %274, %275 : vector<15x16xf32>
    %277 = math.absf %276 : vector<15x16xf32>
    %278 = arith.mulf %277, %21 : vector<15x16xf32>
    %279 = vector.shape_cast %278 : vector<15x16xf32> to vector<1x15x16xf32>
    %cst_58 = arith.constant dense<0.000000e+00> : vector<1xf32>
    %280 = vector.multi_reduction <add>, %279, %cst_58 [1, 2] : vector<1x15x16xf32> to vector<1xf32>
    %281 = vector.shape_cast %280 : vector<1xf32> to vector<1x1x1xf32>
    %282 = vector.extract %281[0, 0, 0] : f32 from vector<1x1x1xf32>
    %283 = arith.addf %152, %282 : f32
    %c0_59 = arith.constant 0 : index
    %c2 = arith.constant 2 : index
    %c0_60 = arith.constant 0 : index
    %c0_61 = arith.constant 0 : index
    %284 = vector.load %arg1[%c0_59, %c2, %c0_60, %c0_61] : memref<1x3x18x18xf32, #tpu.memory_space<vmem>>, vector<1x1x18x18xf32>
    %285 = vector.shape_cast %284 : vector<1x1x18x18xf32> to vector<18x18xf32>
    %c0_62 = arith.constant 0 : index
    %c2_63 = arith.constant 2 : index
    %c0_64 = arith.constant 0 : index
    %c0_65 = arith.constant 0 : index
    %286 = vector.load %arg2[%c0_62, %c2_63, %c0_64, %c0_65] : memref<1x3x18x18xf32, #tpu.memory_space<vmem>>, vector<1x1x18x18xf32>
    %287 = vector.shape_cast %286 : vector<1x1x18x18xf32> to vector<18x18xf32>
    %288 = vector.extract_strided_slice %285 {offsets = [1, 1], sizes = [16, 16], strides = [1, 1]} : vector<18x18xf32> to vector<16x16xf32>
    %289 = vector.extract_strided_slice %287 {offsets = [1, 1], sizes = [16, 16], strides = [1, 1]} : vector<18x18xf32> to vector<16x16xf32>
    %290 = vector.extract_strided_slice %285 {offsets = [0, 0], sizes = [16, 18], strides = [1, 1]} : vector<18x18xf32> to vector<16x18xf32>
    %291 = vector.extract_strided_slice %285 {offsets = [1, 0], sizes = [16, 18], strides = [1, 1]} : vector<18x18xf32> to vector<16x18xf32>
    %292 = arith.addf %290, %291 : vector<16x18xf32>
    %293 = vector.extract_strided_slice %285 {offsets = [2, 0], sizes = [16, 18], strides = [1, 1]} : vector<18x18xf32> to vector<16x18xf32>
    %294 = arith.addf %292, %293 : vector<16x18xf32>
    %295 = vector.extract_strided_slice %294 {offsets = [0, 0], sizes = [16, 16], strides = [1, 1]} : vector<16x18xf32> to vector<16x16xf32>
    %296 = vector.extract_strided_slice %294 {offsets = [0, 1], sizes = [16, 16], strides = [1, 1]} : vector<16x18xf32> to vector<16x16xf32>
    %297 = arith.addf %295, %296 : vector<16x16xf32>
    %298 = vector.extract_strided_slice %294 {offsets = [0, 2], sizes = [16, 16], strides = [1, 1]} : vector<16x18xf32> to vector<16x16xf32>
    %299 = arith.addf %297, %298 : vector<16x16xf32>
    %300 = vector.extract_strided_slice %287 {offsets = [0, 0], sizes = [16, 18], strides = [1, 1]} : vector<18x18xf32> to vector<16x18xf32>
    %301 = vector.extract_strided_slice %287 {offsets = [1, 0], sizes = [16, 18], strides = [1, 1]} : vector<18x18xf32> to vector<16x18xf32>
    %302 = arith.addf %300, %301 : vector<16x18xf32>
    %303 = vector.extract_strided_slice %287 {offsets = [2, 0], sizes = [16, 18], strides = [1, 1]} : vector<18x18xf32> to vector<16x18xf32>
    %304 = arith.addf %302, %303 : vector<16x18xf32>
    %305 = vector.extract_strided_slice %304 {offsets = [0, 0], sizes = [16, 16], strides = [1, 1]} : vector<16x18xf32> to vector<16x16xf32>
    %306 = vector.extract_strided_slice %304 {offsets = [0, 1], sizes = [16, 16], strides = [1, 1]} : vector<16x18xf32> to vector<16x16xf32>
    %307 = arith.addf %305, %306 : vector<16x16xf32>
    %308 = vector.extract_strided_slice %304 {offsets = [0, 2], sizes = [16, 16], strides = [1, 1]} : vector<16x18xf32> to vector<16x16xf32>
    %309 = arith.addf %307, %308 : vector<16x16xf32>
    %310 = arith.mulf %285, %285 : vector<18x18xf32>
    %311 = vector.extract_strided_slice %310 {offsets = [0, 0], sizes = [16, 18], strides = [1, 1]} : vector<18x18xf32> to vector<16x18xf32>
    %312 = vector.extract_strided_slice %310 {offsets = [1, 0], sizes = [16, 18], strides = [1, 1]} : vector<18x18xf32> to vector<16x18xf32>
    %313 = arith.addf %311, %312 : vector<16x18xf32>
    %314 = vector.extract_strided_slice %310 {offsets = [2, 0], sizes = [16, 18], strides = [1, 1]} : vector<18x18xf32> to vector<16x18xf32>
    %315 = arith.addf %313, %314 : vector<16x18xf32>
    %316 = vector.extract_strided_slice %315 {offsets = [0, 0], sizes = [16, 16], strides = [1, 1]} : vector<16x18xf32> to vector<16x16xf32>
    %317 = vector.extract_strided_slice %315 {offsets = [0, 1], sizes = [16, 16], strides = [1, 1]} : vector<16x18xf32> to vector<16x16xf32>
    %318 = arith.addf %316, %317 : vector<16x16xf32>
    %319 = vector.extract_strided_slice %315 {offsets = [0, 2], sizes = [16, 16], strides = [1, 1]} : vector<16x18xf32> to vector<16x16xf32>
    %320 = arith.addf %318, %319 : vector<16x16xf32>
    %321 = arith.mulf %287, %287 : vector<18x18xf32>
    %322 = vector.extract_strided_slice %321 {offsets = [0, 0], sizes = [16, 18], strides = [1, 1]} : vector<18x18xf32> to vector<16x18xf32>
    %323 = vector.extract_strided_slice %321 {offsets = [1, 0], sizes = [16, 18], strides = [1, 1]} : vector<18x18xf32> to vector<16x18xf32>
    %324 = arith.addf %322, %323 : vector<16x18xf32>
    %325 = vector.extract_strided_slice %321 {offsets = [2, 0], sizes = [16, 18], strides = [1, 1]} : vector<18x18xf32> to vector<16x18xf32>
    %326 = arith.addf %324, %325 : vector<16x18xf32>
    %327 = vector.extract_strided_slice %326 {offsets = [0, 0], sizes = [16, 16], strides = [1, 1]} : vector<16x18xf32> to vector<16x16xf32>
    %328 = vector.extract_strided_slice %326 {offsets = [0, 1], sizes = [16, 16], strides = [1, 1]} : vector<16x18xf32> to vector<16x16xf32>
    %329 = arith.addf %327, %328 : vector<16x16xf32>
    %330 = vector.extract_strided_slice %326 {offsets = [0, 2], sizes = [16, 16], strides = [1, 1]} : vector<16x18xf32> to vector<16x16xf32>
    %331 = arith.addf %329, %330 : vector<16x16xf32>
    %332 = arith.mulf %285, %287 : vector<18x18xf32>
    %333 = vector.extract_strided_slice %332 {offsets = [0, 0], sizes = [16, 18], strides = [1, 1]} : vector<18x18xf32> to vector<16x18xf32>
    %334 = vector.extract_strided_slice %332 {offsets = [1, 0], sizes = [16, 18], strides = [1, 1]} : vector<18x18xf32> to vector<16x18xf32>
    %335 = arith.addf %333, %334 : vector<16x18xf32>
    %336 = vector.extract_strided_slice %332 {offsets = [2, 0], sizes = [16, 18], strides = [1, 1]} : vector<18x18xf32> to vector<16x18xf32>
    %337 = arith.addf %335, %336 : vector<16x18xf32>
    %338 = vector.extract_strided_slice %337 {offsets = [0, 0], sizes = [16, 16], strides = [1, 1]} : vector<16x18xf32> to vector<16x16xf32>
    %339 = vector.extract_strided_slice %337 {offsets = [0, 1], sizes = [16, 16], strides = [1, 1]} : vector<16x18xf32> to vector<16x16xf32>
    %340 = arith.addf %338, %339 : vector<16x16xf32>
    %341 = vector.extract_strided_slice %337 {offsets = [0, 2], sizes = [16, 16], strides = [1, 1]} : vector<16x18xf32> to vector<16x16xf32>
    %342 = arith.addf %340, %341 : vector<16x16xf32>
    %343 = arith.mulf %299, %309 : vector<16x16xf32>
    %344 = arith.mulf %299, %299 : vector<16x16xf32>
    %345 = arith.mulf %309, %309 : vector<16x16xf32>
    %cst_66 = arith.constant 9.000000e+00 : f32
    %346 = vector.broadcast %cst_66 : f32 to vector<16x16xf32>
    %347 = arith.mulf %346, %342 : vector<16x16xf32>
    %348 = arith.subf %347, %343 : vector<16x16xf32>
    %cst_67 = arith.constant 9.000000e+00 : f32
    %349 = vector.broadcast %cst_67 : f32 to vector<16x16xf32>
    %350 = arith.mulf %349, %320 : vector<16x16xf32>
    %351 = arith.subf %350, %344 : vector<16x16xf32>
    %cst_68 = arith.constant 9.000000e+00 : f32
    %352 = vector.broadcast %cst_68 : f32 to vector<16x16xf32>
    %353 = arith.mulf %352, %331 : vector<16x16xf32>
    %354 = arith.subf %353, %345 : vector<16x16xf32>
    %355 = arith.addf %343, %343 : vector<16x16xf32>
    %cst_69 = arith.constant 8.100000e-03 : f32
    %356 = vector.broadcast %cst_69 : f32 to vector<16x16xf32>
    %357 = arith.addf %355, %356 : vector<16x16xf32>
    %358 = arith.addf %348, %348 : vector<16x16xf32>
    %cst_70 = arith.constant 7.290000e-02 : f32
    %359 = vector.broadcast %cst_70 : f32 to vector<16x16xf32>
    %360 = arith.addf %358, %359 : vector<16x16xf32>
    %361 = arith.mulf %357, %360 : vector<16x16xf32>
    %362 = arith.addf %344, %345 : vector<16x16xf32>
    %cst_71 = arith.constant 8.100000e-03 : f32
    %363 = vector.broadcast %cst_71 : f32 to vector<16x16xf32>
    %364 = arith.addf %362, %363 : vector<16x16xf32>
    %365 = arith.addf %351, %354 : vector<16x16xf32>
    %cst_72 = arith.constant 7.290000e-02 : f32
    %366 = vector.broadcast %cst_72 : f32 to vector<16x16xf32>
    %367 = arith.addf %365, %366 : vector<16x16xf32>
    %368 = arith.mulf %364, %367 : vector<16x16xf32>
    %369 = tpu.reciprocal %368 {approx = true} : vector<16x16xf32> -> vector<16x16xf32>
    %370 = arith.mulf %368, %369 : vector<16x16xf32>
    %cst_73 = arith.constant 2.000000e+00 : f32
    %371 = vector.broadcast %cst_73 : f32 to vector<16x16xf32>
    %372 = arith.subf %371, %370 : vector<16x16xf32>
    %373 = arith.mulf %369, %372 : vector<16x16xf32>
    %374 = arith.mulf %361, %373 : vector<16x16xf32>
    %cst_74 = arith.constant 1.000000e+00 : f32
    %375 = vector.broadcast %cst_74 : f32 to vector<16x16xf32>
    %376 = arith.subf %375, %374 : vector<16x16xf32>
    %cst_75 = arith.constant 5.000000e-01 : f32
    %377 = vector.broadcast %cst_75 : f32 to vector<16x16xf32>
    %378 = arith.mulf %376, %377 : vector<16x16xf32>
    %cst_76 = arith.constant 0.000000e+00 : f32
    %cst_77 = arith.constant 1.000000e+00 : f32
    %379 = vector.broadcast %cst_76 : f32 to vector<16x16xf32>
    %380 = arith.maximumf %379, %378 : vector<16x16xf32>
    %381 = vector.broadcast %cst_77 : f32 to vector<16x16xf32>
    %382 = arith.minimumf %381, %380 : vector<16x16xf32>
    %383 = vector.shape_cast %382 : vector<16x16xf32> to vector<1x16x16xf32>
    %cst_78 = arith.constant dense<0.000000e+00> : vector<1xf32>
    %384 = vector.multi_reduction <add>, %383, %cst_78 [1, 2] : vector<1x16x16xf32> to vector<1xf32>
    %385 = vector.shape_cast %384 : vector<1xf32> to vector<1x1x1xf32>
    %386 = vector.extract %385[0, 0, 0] : f32 from vector<1x1x1xf32>
    %387 = arith.addf %256, %386 : f32
    %388 = arith.subf %289, %288 : vector<16x16xf32>
    %389 = math.absf %388 : vector<16x16xf32>
    %390 = vector.shape_cast %389 : vector<16x16xf32> to vector<1x16x16xf32>
    %cst_79 = arith.constant dense<0.000000e+00> : vector<1xf32>
    %391 = vector.multi_reduction <add>, %390, %cst_79 [1, 2] : vector<1x16x16xf32> to vector<1xf32>
    %392 = vector.shape_cast %391 : vector<1xf32> to vector<1x1x1xf32>
    %393 = vector.extract %392[0, 0, 0] : f32 from vector<1x1x1xf32>
    %394 = arith.addf %263, %393 : f32
    %395 = vector.extract_strided_slice %288 {offsets = [0, 0], sizes = [16, 15], strides = [1, 1]} : vector<16x16xf32> to vector<16x15xf32>
    %396 = vector.extract_strided_slice %288 {offsets = [0, 1], sizes = [16, 15], strides = [1, 1]} : vector<16x16xf32> to vector<16x15xf32>
    %397 = arith.subf %395, %396 : vector<16x15xf32>
    %398 = math.absf %397 : vector<16x15xf32>
    %399 = arith.mulf %398, %18 : vector<16x15xf32>
    %400 = vector.shape_cast %399 : vector<16x15xf32> to vector<1x16x15xf32>
    %cst_80 = arith.constant dense<0.000000e+00> : vector<1xf32>
    %401 = vector.multi_reduction <add>, %400, %cst_80 [1, 2] : vector<1x16x15xf32> to vector<1xf32>
    %402 = vector.shape_cast %401 : vector<1xf32> to vector<1x1x1xf32>
    %403 = vector.extract %402[0, 0, 0] : f32 from vector<1x1x1xf32>
    %404 = arith.addf %273, %403 : f32
    %405 = vector.extract_strided_slice %288 {offsets = [0, 0], sizes = [15, 16], strides = [1, 1]} : vector<16x16xf32> to vector<15x16xf32>
    %406 = vector.extract_strided_slice %288 {offsets = [1, 0], sizes = [15, 16], strides = [1, 1]} : vector<16x16xf32> to vector<15x16xf32>
    %407 = arith.subf %405, %406 : vector<15x16xf32>
    %408 = math.absf %407 : vector<15x16xf32>
    %409 = arith.mulf %408, %21 : vector<15x16xf32>
    %410 = vector.shape_cast %409 : vector<15x16xf32> to vector<1x15x16xf32>
    %cst_81 = arith.constant dense<0.000000e+00> : vector<1xf32>
    %411 = vector.multi_reduction <add>, %410, %cst_81 [1, 2] : vector<1x15x16xf32> to vector<1xf32>
    %412 = vector.shape_cast %411 : vector<1xf32> to vector<1x1x1xf32>
    %413 = vector.extract %412[0, 0, 0] : f32 from vector<1x1x1xf32>
    %414 = arith.addf %283, %413 : f32
    %415 = tpu.iota {dimensions = array<i32: 0>} : vector<8x128xi32>
    %c0_i32 = arith.constant 0 : i32
    %416 = vector.broadcast %c0_i32 : i32 to vector<8x128xi32>
    %417 = arith.cmpi eq, %415, %416 : vector<8x128xi32>
    %c1_i32 = arith.constant 1 : i32
    %418 = vector.broadcast %c1_i32 : i32 to vector<8x128xi32>
    %419 = arith.cmpi eq, %415, %418 : vector<8x128xi32>
    %c2_i32 = arith.constant 2 : i32
    %420 = vector.broadcast %c2_i32 : i32 to vector<8x128xi32>
    %421 = arith.cmpi eq, %415, %420 : vector<8x128xi32>
    %c3_i32 = arith.constant 3 : i32
    %422 = vector.broadcast %c3_i32 : i32 to vector<8x128xi32>
    %423 = arith.cmpi eq, %415, %422 : vector<8x128xi32>
    %cst_82 = arith.constant 0.000000e+00 : f32
    %424 = vector.broadcast %414 : f32 to vector<8x128xf32>
    %425 = vector.broadcast %cst_82 : f32 to vector<8x128xf32>
    %426 = arith.select %423, %424, %425 : vector<8x128xi1>, vector<8x128xf32>
    %427 = vector.broadcast %404 : f32 to vector<8x128xf32>
    %428 = arith.select %421, %427, %426 : vector<8x128xi1>, vector<8x128xf32>
    %429 = vector.broadcast %394 : f32 to vector<8x128xf32>
    %430 = arith.select %419, %429, %428 : vector<8x128xi1>, vector<8x128xf32>
    %431 = vector.broadcast %387 : f32 to vector<8x128xf32>
    %432 = arith.select %417, %431, %430 : vector<8x128xi1>, vector<8x128xf32>
    %c0_83 = arith.constant 0 : index
    %c0_84 = arith.constant 0 : index
    %c0_85 = arith.constant 0 : index
    %433 = vector.load %arg4[%c0_83, %c0_84, %c0_85] : memref<1x8x128xf32, #tpu.memory_space<vmem>>, vector<1x8x128xf32>
    %434 = vector.shape_cast %433 : vector<1x8x128xf32> to vector<8x128xf32>
    %435 = vector.shape_cast %432 : vector<8x128xf32> to vector<1x8x128xf32>
    tpu.vector_store %arg4[%c0_83, %c0_84, %c0_85], %435 {strides = array<i32>} : memref<1x8x128xf32, #tpu.memory_space<vmem>>, vector<1x8x128xf32>,
    return
  }
  func.func @transform_0(%arg0: i32) -> (i32, i32, i32, i32) {
    %c0_i32 = arith.constant 0 : i32
    %c0_i32_0 = arith.constant 0 : i32
    %c0_i32_1 = arith.constant 0 : i32
    %c0_i32_2 = arith.constant 0 : i32
    return %arg0, %c0_i32, %c0_i32_0, %c0_i32_1 : i32, i32, i32, i32
  }
  func.func @transform_1(%arg0: i32) -> (i32, i32, i32, i32) {
    %c0_i32 = arith.constant 0 : i32
    %c0_i32_0 = arith.constant 0 : i32
    %c0_i32_1 = arith.constant 0 : i32
    %c0_i32_2 = arith.constant 0 : i32
    return %arg0, %c0_i32, %c0_i32_0, %c0_i32_1 : i32, i32, i32, i32
  }
  func.func @transform_2(%arg0: i32) -> (i32, i32, i32, i32) {
    %c0_i32 = arith.constant 0 : i32
    %c0_i32_0 = arith.constant 0 : i32
    %c0_i32_1 = arith.constant 0 : i32
    %c0_i32_2 = arith.constant 0 : i32
    return %arg0, %c0_i32, %c0_i32_0, %c0_i32_1 : i32, i32, i32, i32
  }
  func.func @transform_3(%arg0: i32) -> (i32, i32, i32) {
    %c0_i32 = arith.constant 0 : i32
    %c0_i32_0 = arith.constant 0 : i32
    %c0_i32_1 = arith.constant 0 : i32
    return %arg0, %c0_i32, %c0_i32_0 : i32, i32, i32
  }
}

</mosaic_0001>

<bundles_post_ra>
// kernel: tpu_custom_call.1
= control target key start
LH: loop header
LB: loop body
LE: loop exit
PB: predicated region body
PF: predicated region fallthrough
CT: control target
= control target key end

     0   :  { %s2764_s0 = inlined_call_operand.vmem [shape: f32[2,3,18,18], index: 0, kind: input, shape index: {}]   ;;  %s2765_s1 = inlined_call_operand.vmem [shape: f32[2,3,18,18], index: 1, kind: input, shape index: {}]   ;;  %s2766_s2 = inlined_call_operand.vmem [shape: f32[2,3,16,16], index: 2, kind: input, shape index: {}]   ;;  %s2767_s3 = inlined_call_operand.hbm [shape: f32[2,8,128], index: 3, kind: output, shape index: {}]  }
   0x1   :  { %2773 = sst [smem:[#allocation9_spill]] %s2764_s0 }
   0x2   :  { %2774 = sst [smem:[#allocation10_spill]] %s2765_s1 }
   0x3   :  { %2775 = sst [smem:[#allocation11_spill]] %s2766_s2 }
   0x4   :  { %8 = vsyncpa [#allocation3], 0 }
   0x5   :  { %10 = vsyncpa [#allocation3 + $0x1], 0  ;;  %s1834_s12 = smov 0   ;;  %s1836_s13 = smov 0  }
   0x6   :  { %s1838_s14 = smov 0   ;;  %s1840_s15 = smov 0  }
   0x7 LB: > { %2776 = sst [smem:[#allocation5_spill]] %s1804_s14  ;;  %s1855_s16 = sadd.s32 4294967295, %s1808_s15   ;;  %s1808_s15 = sphi %s1840_s15, %s2787_s15   ;;  %s1804_s14 = sphi %s1838_s14, %s2789_s14   ;;  %s1800_s13 = sphi %s1836_s13, %s2791_s13   ;;  %s1796_s12 = sphi %s1834_s12, %s2790_s12  }
   0x8   : > { %s1631_s17 = sadd.s32 4294967294, %s1808_s15   ;;  %s1859_s18 = sadd.s32 1, %s1808_s15  }
   0x9   : > { %2777 = sst [smem:[#allocation6_spill]] %s1859_s18  ;;  %s101_s19 = sadd.s32 1, %s1804_s14 }
   0xa   : > { %s98_s20 = ssub.s32 %s1808_s15, %s1859_s18  ;;  %p111_p0 = scmp.ne.s32.totalorder %s1804_s14, %s1800_s13 }
   0xb   : > { %p99_p1 = scmp.eq.s32.totalorder %s98_s20, 0  ;;  %p112_p2 = scmp.eq.s32.totalorder %s1855_s16, 1 }
   0xc   : > { %p117_p3 = scmp.ne.s32.totalorder %s1800_s13, %s1796_s12  ;;  %p118_p4 = scmp.eq.s32.totalorder %s1631_s17, 1 }
   0xd   : > { %s1870_s21 = scalar_select %p99_p1, %s1804_s14, %s101_s19  }
   0xe   : > { %p1872_p5 = por %p112_p2, %p111_p0  ;;  %p1876_p6 = por %p118_p4, %p117_p3 }
   0xf   : > { %2778 = sst [smem:[#allocation7_spill]] %s1870_s21  ;;  %p1634_p7 = scmp.ge.s32.totalorder %s1808_s15, 1 }
  0x10   : > { %s2780_s23 = scalar_select %p1876_p6, 1, 0 }
  0x11   : > { %p160_p8 = scmp.lt.s32.totalorder %s1808_s15, 3 }
  0x12   : > { %2781 = sst [smem:[#allocation8_spill]] %s2780_s23 }
  0x13   : > { %p161_p9 = pnand %p1634_p7, %p160_p8 }
  0x14   : > { %p194_p10 = scmp.lt.s32.totalorder (!%p161_p9), %s1855_s16, 1  ;;  %s2782_s2 = sld [smem:[#allocation11_spill]] (!%p161_p9) }
  0x15   : > { %164 = sbr.rel (%p161_p9) target bundleno = 925 (0x39d), region = 32  ;;  %s2783_s0 = sld [smem:[#allocation9_spill]] (!%p161_p9) }
  0x16   : > { %s1810_s6 = smov (!%p161_p9), 127   ;;  %s2784_s1 = sld [smem:[#allocation10_spill]] (!%p161_p9) }
  0x17   : > { %s1811_s10 = smov (!%p161_p9), 126   ;;  %s1813_s11 = smov (!%p161_p9), 1  }
  0x18   : > { %s2772_s28 = sand.u32 (!%p161_p9), 1, %s1800_s13  }
  0x19   : > { %s2728_s4 = sshll.u32 (!%p161_p9), %s2772_s28, 3 }
  0x1a   : > { %s195_s24 = scalar_select %p194_p10, %s1855_s16, 1  ;;  %vm271_vm0 = vcmask 1046528   ;;  %vm343_vm1 = vcmask 1045504   ;;  %v1812_v59 = vmov 3.0   ;;  %vm305_vm2 = vcmask 129024  }
  0x1b   : > { %1724 = vrcp.f32 %v1812_v59  ;;  %vm299_vm3 = vcmask 130048   ;;  %vm655_vm5 = vcmask 1040384   ;;  %vm251_vm6 = vcmask 121856  }
  0x1c   : > { %s1656_s25 = smul.u32 48, %s195_s24 }
  0x1d   : > { %s1655_s26 = smul.u32 72, %s195_s24 }
  0x1e   : > { %s208_s29 = scalar_lea.vmem %s2782_s2, %s1656_s25 }
  0x1f   : > { %v1887_v0 = vld [vmem:[%s208_s29 + $0x10] sm:$0xff]  ;;  %s1892_s5 = scalar_lea.vmem %s2783_s0, %s1655_s26  ;;  %v1894_v1 = vld [vmem:[%s208_s29] sm:$0xff]  ;;  %s1915_s9 = scalar_lea.vmem %s2784_s1, %s1655_s26  ;;  %v1920_v8 = vld [vmem:[%s208_s29 + $0x18] sm:$0xff] }
  0x20   : > { %v1896_v2 = vld [vmem:[%s208_s29 + $0x20] sm:$0xff]  ;;  %225 = vrot.lane.b32.xlu1 %v1887_v0, %s1810_s6  ;;  %221 = vrot.lane.b32.xlu0 %v1894_v1, %s1810_s6  ;;  %v1905_v3 = vld [vmem:[%s1892_s5 + $0x8] sm:$0xff]  ;;  %v275_v26 = vrot.slane %v1887_v0, 1  ;;  %v272_v27 = vrot.slane %v1894_v1, 1  ;;  %v276_v28 = vrot.slane %v1920_v8, 1  ;;  %s2785_s0 = sand.u32 1, %s1800_s13  }
  0x21   : > { %229 = vrot.lane.b32.xlu2 %v1896_v2, %s1810_s6  ;;  %v1908_v4 = vld [vmem:[%s1892_s5 + $0x10] sm:$0x3]  ;;  %v335_v5 = vrot.slane %v1905_v3, 1  ;;  %v1918_v7 = vld [vmem:[%s1892_s5] sm:$0xff]  ;;  %v1922_v9 = vld [vmem:[%s208_s29 + $0x8] sm:$0xff]  ;;  %v345_v11 = vrot.slane %v1905_v3, 2  ;;  %v1975_v37 = vmul.f32 %v1905_v3, %v1905_v3 }
  0x22   : > { %v337_v6 = vrot.slane %v1908_v4, 1  ;;  %v347_v12 = vrot.slane %v1908_v4, 2  ;;  %v1929_v13 = vld [vmem:[%s208_s29 + $0x28] sm:$0xff]  ;;  %v1932_v14 = vld [vmem:[%s1915_s9] sm:$0xff]  ;;  %v334_v16 = vrot.slane %v1918_v7, 1  ;;  %v344_v18 = vrot.slane %v1918_v7, 2 }
  0x23   : > { %v1935_v15 = vld [vmem:[%s1915_s9 + $0x8] sm:$0xff]  ;;  %v1946_v19 = vld [vmem:[%s1915_s9 + $0x10] sm:$0x3]  ;;  %v374_v22 = vrot.slane %v1932_v14, 1  ;;  %v273_v30 = vrot.slane %v1922_v9, 1  ;;  %v383_v33 = vrot.slane %v1932_v14, 2  ;;  %v410_v36 = vmul.f32 %v1918_v7, %v1918_v7 }
  0x24   : > { %v1925_v10 = vsel %vm271_vm0, %v335_v5, %v337_v6  ;;  %v348_v20 = vsel %vm343_vm1, %v345_v11, %v347_v12  ;;  %v1952_v21 = vsel %vm271_vm0, %v334_v16, %v335_v5  ;;  %v375_v23 = vrot.slane %v1935_v15, 1 }
  0x25   : > { %v342_v17 = vadd.f32 %v1925_v10, %v1905_v3  ;;  %v341_v24 = vadd.f32 %v1952_v21, %v1918_v7  ;;  %v346_v25 = vsel %vm343_vm1, %v344_v18, %v345_v11  ;;  %v377_v29 = vrot.slane %v1946_v19, 1 }
  0x26   : > { %v376_v34 = vsel %vm271_vm0, %v374_v22, %v375_v23  ;;  %v384_v35 = vrot.slane %v1935_v15, 2  ;;  %v386_v39 = vrot.slane %v1946_v19, 2  ;;  %v277_v40 = vsel %vm271_vm0, %v275_v26, %v276_v28 }
  0x27   : > { %v1964_v31 = vadd.f32 %v348_v20, %v342_v17  ;;  %v1966_v32 = vadd.f32 %v346_v25, %v341_v24  ;;  %v378_v38 = vsel %vm271_vm0, %v375_v23, %v377_v29  ;;  %v274_v41 = vsel %vm271_vm0, %v272_v27, %v273_v30  ;;  %v1725_v23 = vpop.eup %1724 }
  0x28   : > { %227 = vrot.lane.b32.xlu1 %v1920_v8, %s1810_s6  ;;  %223 = vrot.lane.b32.xlu0 %v1922_v9, %s1810_s6  ;;  %v381_v42 = vadd.f32 %v376_v34, %v1932_v14  ;;  %v385_v43 = vsel %vm343_vm1, %v383_v33, %v384_v35  ;;  %v382_v44 = vadd.f32 %v378_v38, %v1935_v15  ;;  %v416_v45 = vrot.slane %v410_v36, 1 }
  0x29   : > { %231 = vrot.lane.b32.xlu2 %v1929_v13, %s1810_s6  ;;  %v417_v46 = vrot.slane %v1975_v37, 1  ;;  %v278_v47 = vrot.slane %v1896_v2, 1  ;;  %v279_v48 = vrot.slane %v1929_v13, 1  ;;  %v387_v49 = vsel %vm343_vm1, %v384_v35, %v386_v39 }
  0x2a   : > { %v289_v50 = vsub.f32 %v1887_v0, %v277_v40  ;;  %v287_v51 = vsub.f32 %v1894_v1, %v274_v41  ;;  %v1996_v52 = vadd.f32 %v385_v43, %v381_v42  ;;  %v412_v53 = vmul.f32 %v1908_v4, %v1908_v4 }
  0x2b   : > { %v2000_v54 = vadd.f32 %v387_v49, %v382_v44  ;;  %v418_v55 = vsel %vm271_vm0, %v416_v45, %v417_v46  ;;  %v425_v56 = vrot.slane %v410_v36, 2  ;;  %v426_v57 = vrot.slane %v1975_v37, 2 }
  0x2c   : > { %v280_v58 = vsel %vm271_vm0, %v278_v47, %v279_v48  ;;  %v290_v60 = vsub.f32 %v1920_v8, %v276_v28  ;;  %v288_v61 = vsub.f32 %v1922_v9, %v273_v30  ;;  %v423_v62 = vadd.f32 %v418_v55, %v410_v36 }
  0x2d   : > { %v419_v63 = vrot.slane %v412_v53, 1  ;;  %v295_v5 = vand.u32 2147483647, %v289_v50  ;;  %v293_v6 = vand.u32 2147483647, %v287_v51  ;;  %v427_v11 = vsel %vm343_vm1, %v425_v56, %v426_v57 }
  0x2e   : > { %v291_v12 = vsub.f32 %v1896_v2, %v280_v58  ;;  %v292_v16 = vsub.f32 %v1929_v13, %v279_v48  ;;  %v296_v17 = vand.u32 2147483647, %v290_v60  ;;  %v294_v18 = vand.u32 2147483647, %v288_v61 }
  0x2f   : > { %v453_v20 = vmul.f32 %v1935_v15, %v1935_v15  ;;  %v454_v22 = vmul.f32 %v1946_v19, %v1946_v19  ;;  %v2020_v24 = vadd.f32 %v427_v11, %v423_v62  ;;  %v420_v25 = vsel %vm271_vm0, %v417_v46, %v419_v63 }
  0x30   : > { %357 = vrot.lane.b32.xlu1 %v1964_v31, %s1810_s6  ;;  %355 = vrot.lane.b32.xlu0 %v1966_v32, %s1810_s6  ;;  %v428_v26 = vrot.slane %v412_v53, 2  ;;  %v452_v27 = vmul.f32 %v1932_v14, %v1932_v14  ;;  %v263_v28 = vmul.f32 3.0, %v1725_v23  ;;  %v297_v29 = vand.u32 2147483647, %v291_v12 }
  0x31   : > { %363 = vrot.lane.b32.xlu2 %v1966_v32, %s1811_s10  ;;  %v300_v30 = vsel %vm299_vm3, %v293_v6, 0.0  ;;  %v301_v33 = vsel %vm299_vm3, %v295_v5, 0.0  ;;  %v307_v34 = vsel %vm305_vm2, %v296_v17, 0.0  ;;  %v306_v35 = vsel %vm305_vm2, %v294_v18, 0.0 }
  0x32   : > { %v298_v36 = vand.u32 2147483647, %v292_v16  ;;  %v264_v38 = vsub.f32 1.0, %v263_v28  ;;  %v424_v39 = vadd.f32 %v420_v25, %v1975_v37  ;;  %v459_v40 = vrot.slane %v453_v20, 1 }
  0x33   : > { %v461_v41 = vrot.slane %v454_v22, 1  ;;  %v302_v42 = vadd.f32 %v301_v33, %v300_v30  ;;  %v429_v43 = vsel %vm343_vm1, %v426_v57, %v428_v26  ;;  %v458_v44 = vrot.slane %v452_v27, 1 }
  0x34   : > { %v265_v45 = vmul.f32 %v1725_v23, %v264_v38  ;;  %v303_v46 = vsel %vm299_vm3, %v297_v29, 0.0  ;;  %v308_v47 = vadd.f32 %v307_v34, %v306_v35  ;;  %vm267_vm4 = vweird.f32 %v1725_v23 }
  0x35   : > { %v309_v48 = vsel %vm305_vm2, %v298_v36, 0.0  ;;  %v468_v49 = vrot.slane %v453_v20, 2  ;;  %v470_v50 = vrot.slane %v454_v22, 2  ;;  %v2039_v37 = vadd.f32 %v429_v43, %v424_v39 }
  0x36   : > { %v266_v51 = vadd.f32 %v1725_v23, %v265_v45  ;;  %v462_v53 = vsel %vm271_vm0, %v459_v40, %v461_v41  ;;  %v467_v55 = vrot.slane %v452_v27, 2  ;;  %v304_v56 = vadd.f32 %v303_v46, %v302_v42 }
  0x37   : > { %v460_v58 = vsel %vm271_vm0, %v458_v44, %v459_v40  ;;  %v494_v57 = vmul.f32 %v1932_v14, %v1918_v7  ;;  %v495_v59 = vmul.f32 %v1935_v15, %v1905_v3  ;;  %v496_v61 = vmul.f32 %v1946_v19, %v1908_v4 }
  0x38   : > { %394 = vrot.lane.b32.xlu1 %v1996_v52, %s1810_s6  ;;  %365 = vrot.lane.b32.xlu0 %v1964_v31, %s1811_s10  ;;  %v2047_v60 = vsel %vm267_vm4, %v1725_v23, %v266_v51  ;;  %v310_v62 = vadd.f32 %v309_v48, %v308_v47  ;;  %v466_v63 = vadd.f32 %v462_v53, %v453_v20 }
  0x39   : > { %396 = vrot.lane.b32.xlu2 %v2000_v54, %s1810_s6  ;;  %v465_v5 = vadd.f32 %v460_v58, %v452_v27  ;;  %v311_v6 = vmul.f32 %v304_v56, %v2047_v60  ;;  %v471_v11 = vsel %vm343_vm1, %v468_v49, %v470_v50  ;;  %v469_v12 = vsel %vm343_vm1, %v467_v55, %v468_v49 }
  0x3a   : > { %v500_v16 = vrot.slane %v494_v57, 1  ;;  %v501_v17 = vrot.slane %v495_v59, 1  ;;  %v503_v18 = vrot.slane %v496_v61, 1  ;;  %v2060_v22 = vadd.f32 %v471_v11, %v466_v63 }
  0x3b   : > { %v2062_v23 = vadd.f32 %v469_v12, %v465_v5  ;;  %v319_v25 = vsub.f32 0.0, %v311_v6  ;;  %v509_v26 = vrot.slane %v494_v57, 2  ;;  %v510_v27 = vrot.slane %v495_v59, 2 }
  0x3c   : > { %v502_v20 = vsel %vm271_vm0, %v500_v16, %v501_v17  ;;  %v312_v28 = vmul.f32 %v310_v62, %v2047_v60  ;;  %v504_v29 = vsel %vm271_vm0, %v501_v17, %v503_v18  ;;  %v512_v30 = vrot.slane %v496_v61, 2  ;;  %v2125_v18 = vld [vmem:[%s1892_s5 + $0x28] sm:$0x3] }
  0x3d   : > { %v507_v33 = vadd.f32 %v502_v20, %v494_v57  ;;  %v321_v34 = vmul.f32 1.442695, %v319_v25  ;;  %v511_v35 = vsel %vm343_vm1, %v509_v26, %v510_v27  ;;  %v508_v36 = vadd.f32 %v504_v29, %v495_v59  ;;  %v2105_v57 = vld [vmem:[%s1892_s5 + $0x18] sm:$0xff]  ;;  %v2108_v59 = vld [vmem:[%s1892_s5 + $0x20] sm:$0xff] }
  0x3e   : > { %v320_v38 = vsub.f32 0.0, %v312_v28  ;;  %v513_v39 = vsel %vm343_vm1, %v510_v27, %v512_v30  ;;  %v606_v43 = vsub.f32 %v1935_v15, %v1905_v3  ;;  %v607_v44 = vsub.f32 %v1946_v19, %v1908_v4 }
  0x3f   : > { %v2075_v40 = vadd.f32 %v511_v35, %v507_v33  ;;  %1726 = vpow2.f32 %v321_v34  ;;  %v2077_v41 = vadd.f32 %v513_v39, %v508_v36  ;;  %v605_v45 = vsub.f32 %v1932_v14, %v1918_v7 }
  0x40   : > { %404 = vrot.lane.b32.xlu1 %v2000_v54, %s1811_s10  ;;  %402 = vrot.lane.b32.xlu0 %v1996_v52, %s1811_s10  ;;  %v323_v42 = vmul.f32 1.442695, %v320_v38  ;;  %v609_v47 = vand.u32 2147483647, %v606_v43  ;;  %v610_v49 = vand.u32 2147483647, %v607_v44 }
  0x41   : > { %436 = vrot.lane.b32.xlu2 %v2020_v24, %s1810_s6  ;;  %v608_v50 = vand.u32 2147483647, %v605_v45  ;;  %v750_v61 = vrot.slane %v2105_v57, 1  ;;  %v751_v62 = vrot.slane %v2108_v59, 1  ;;  %v759_v5 = vrot.slane %v2105_v57, 2 }
  0x42   : > { %1728 = vpow2.f32 %v323_v42  ;;  %v615_v15 = vrot.slane %v609_v47, 1  ;;  %v617_v14 = vrot.slane %v610_v49, 1  ;;  %v760_v6 = vrot.slane %v2108_v59, 2 }
  0x43   : > { %v614_v19 = vrot.slane %v608_v50, 1  ;;  %v2113_v63 = vsel %vm271_vm0, %v750_v61, %v751_v62  ;;  %v753_v25 = vrot.slane %v2125_v18, 1  ;;  %v762_v26 = vrot.slane %v2125_v18, 2 }
  0x44   : > { %v618_v55 = vsel %vm271_vm0, %v615_v15, %v617_v14  ;;  %v757_v11 = vadd.f32 %v2105_v57, %v2113_v63  ;;  %v761_v12 = vsel %vm343_vm1, %v759_v5, %v760_v6 }
  0x45   : > { %v1727_v46 = vpop.eup %1726  ;;  %v616_v56 = vsel %vm271_vm0, %v614_v19, %v615_v15  ;;  %v2131_v20 = vsel %vm271_vm0, %v751_v62, %v753_v25  ;;  %v763_v28 = vsel %vm343_vm1, %v760_v6, %v762_v26 }
  0x46   : > { %v704_v48 = vrot.slane %v1727_v46, 7  ;;  %v2122_v16 = vadd.f32 %v761_v12, %v757_v11  ;;  %v758_v27 = vadd.f32 %v2108_v59, %v2131_v20 }
  0x48   : > { %444 = vrot.lane.b32.xlu1 %v2020_v24, %s1811_s10  ;;  %438 = vrot.lane.b32.xlu0 %v2039_v37, %s1810_s6  ;;  %v1729_v51 = vpop.eup %1728  ;;  %v2139_v29 = vadd.f32 %v763_v28, %v758_v27  ;;  %v825_v28 = vmul.f32 %v2105_v57, %v2105_v57 }
  0x49   : > { %446 = vrot.lane.b32.xlu2 %v2039_v37, %s1811_s10  ;;  %v705_v53 = vrot.slane %v1729_v51, 7 }
  0x4b   : > { %v706_v58 = vsel %vm655_vm5, %v704_v48, %v705_v53 }
  0x50   : > { %480 = vrot.lane.b32.xlu1 %v2060_v22, %s1810_s6  ;;  %478 = vrot.lane.b32.xlu0 %v2062_v23, %s1810_s6 }
  0x51   : > { %486 = vrot.lane.b32.xlu2 %v2062_v23, %s1811_s10 }
  0x58   : > { %520 = vrot.lane.b32.xlu1 %v2075_v40, %s1810_s6  ;;  %488 = vrot.lane.b32.xlu0 %v2060_v22, %s1811_s10 }
  0x59   : > { %522 = vrot.lane.b32.xlu2 %v2077_v41, %s1810_s6 }
  0x60   : > { %530 = vrot.lane.b32.xlu1 %v2077_v41, %s1811_s10  ;;  %528 = vrot.lane.b32.xlu0 %v2075_v40, %s1811_s10 }
  0x61   : > { %707 = vrot.lane.b32.xlu2 %v704_v48, %s1813_s11 }
  0x68   : > { %621 = vrot.lane.b32.xlu1 %v618_v55, %s1810_s6  ;;  %619 = vrot.lane.b32.xlu0 %v616_v56, %s1810_s6 }
  0x69   : > { %709 = vrot.lane.b32.xlu2 %v706_v58, %s1813_s11 }
  0x70   : > { %638 = vrot.lane.b32.xlu1 %v1918_v7, %s1810_s6 }
  0x71   : > { %770 = vrot.lane.b32.xlu2 %v2122_v16, %s1810_s6 }
  0x78   : > { %640 = vrot.lane.b32.xlu1 %v1905_v3, %s1810_s6 }
  0x79   : > { %772 = vrot.lane.b32.xlu2 %v2139_v29, %s1810_s6 }
  0x7b   : > { %v230_v17 = vpop.permute.xlu2 %229 }
  0x7c   : > { %v243_v34 = vsub.f32 %v1896_v2, %v230_v17 }
  0x7e   : > { %v249_v38 = vand.u32 2147483647, %v243_v34 }
  0x80   : > { %642 = vrot.lane.b32.xlu1 %v1908_v4, %s1810_s6  ;;  %v255_v46 = vsel %vm251_vm6, %v249_v38, 0.0 }
  0x81   : > { %778 = vrot.lane.b32.xlu2 %v2122_v16, %s1811_s10 }
  0x83   : > { %v232_v30 = vpop.permute.xlu2 %231 }
  0x84   : > { %v244_v47 = vsub.f32 %v1929_v13, %v232_v30  ;;  %v2171_v30 = vmul.f32 %v2108_v59, %v2108_v59 }
  0x88   : > { %780 = vrot.lane.b32.xlu1 %v2139_v29, %s1811_s10 }
  0x8b   : > { %v2145_v33 = vpop.permute.xlu2 %363 }
  0x92   : > { %v226_v35 = vpop.permute.xlu1 %225  ;;  %v222_v36 = vpop.permute.xlu0 %221 }
  0x93   : > { %v241_v39 = vsub.f32 %v1887_v0, %v226_v35  ;;  %v239_v42 = vsub.f32 %v1894_v1, %v222_v36  ;;  %v2152_v43 = vpop.permute.xlu2 %396  ;;  %v250_v0 = vand.u32 2147483647, %v244_v47 }
  0x95   : > { %v247_v44 = vand.u32 2147483647, %v241_v39  ;;  %v245_v45 = vand.u32 2147483647, %v239_v42  ;;  %v260_v13 = vsel %vm251_vm6, %v250_v0, 0.0  ;;  %v831_v39 = vrot.slane %v825_v28, 1 }
  0x97   : > { %v253_v48 = vsel %vm251_vm6, %v247_v44, 0.0  ;;  %v252_v2 = vsel %vm251_vm6, %v245_v45, 0.0  ;;  %v840_v45 = vrot.slane %v825_v28, 2 }
  0x98   : > { %v254_v49 = vadd.f32 %v253_v48, %v252_v2 }
  0x9a   : > { %v256_v50 = vadd.f32 %v255_v46, %v254_v49  ;;  %v228_v51 = vpop.permute.xlu1 %227  ;;  %v224_v15 = vpop.permute.xlu0 %223  ;;  %v841_v46 = vrot.slane %v2171_v30, 2 }
  0x9b   : > { %v242_v1 = vsub.f32 %v1920_v8, %v228_v51  ;;  %v240_v14 = vsub.f32 %v1922_v9, %v224_v15  ;;  %v437_v19 = vpop.permute.xlu2 %436  ;;  %v1098_v15 = vsub.f32 %v2105_v57, %v2113_v63  ;;  %v1099_v63 = vsub.f32 %v2108_v59, %v2131_v20 }
  0x9c   : > { %v269_v53 = vmul.f32 %v2047_v60, %v256_v50  ;;  %v842_v0 = vsel %vm343_vm1, %v840_v45, %v841_v46 }
  0x9d   : > { %v248_v55 = vand.u32 2147483647, %v242_v1  ;;  %v246_v56 = vand.u32 2147483647, %v240_v14  ;;  %v1100_v14 = vand.u32 2147483647, %v1098_v15 }
  0x9e   : > { %v313_v58 = vsub.f32 0.0, %v269_v53 }
  0x9f   : > { %v258_v61 = vsel %vm251_vm6, %v248_v55, 0.0  ;;  %v257_v62 = vsel %vm251_vm6, %v246_v56, 0.0 }
  0xa0   : > { %v259_v5 = vadd.f32 %v258_v61, %v257_v62  ;;  %v315_v6 = vmul.f32 1.442695, %v313_v58  ;;  %v442_v61 = vadd.f32 %v437_v19, %v2020_v24 }
  0xa2   : > { %v261_v11 = vadd.f32 %v260_v13, %v259_v5  ;;  %v358_v12 = vpop.permute.xlu1 %357  ;;  %v356_v17 = vpop.permute.xlu0 %355  ;;  %1730 = vpow2.f32 %v315_v6  ;;  %v699_v13 = vsub.f32 %v1905_v3, %v1925_v10 }
  0xa3   : > { %v2164_v8 = vpop.permute.xlu2 %446  ;;  %v361_v62 = vadd.f32 %v356_v17, %v1966_v32 }
  0xa4   : > { %v270_v9 = vmul.f32 %v2047_v60, %v261_v11  ;;  %v832_v60 = vrot.slane %v2171_v30, 1  ;;  %v701_v6 = vand.u32 2147483647, %v699_v13  ;;  %v1101_v11 = vand.u32 2147483647, %v1099_v63 }
  0xa5   : > { %v369_v10 = vadd.f32 %v2145_v33, %v361_v62  ;;  %v362_v33 = vadd.f32 %v358_v12, %v1964_v31 }
  0xa6   : > { %v314_v25 = vsub.f32 0.0, %v270_v9  ;;  %v833_v44 = vsel %vm271_vm0, %v831_v39, %v832_v60 }
  0xa7   : > { %v838_v51 = vadd.f32 %v833_v44, %v825_v28  ;;  %v401_v28 = vadd.f32 %v2152_v43, %v2000_v54 }
  0xa8   : > { %v1731_v26 = vpop.eup %1730  ;;  %v317_v27 = vmul.f32 1.442695, %v314_v25 }
  0xa9   : > { %v656_v34 = vrot.slane %v1731_v26, 7  ;;  %v2187_v1 = vadd.f32 %v842_v0, %v838_v51 }
  0xaa   : > { %v395_v35 = vpop.permute.xlu1 %394  ;;  %v366_v36 = vpop.permute.xlu0 %365  ;;  %1732 = vpow2.f32 %v317_v27 }
  0xab   : > { %659 = vrot.lane.b32.xlu1 %v656_v34, %s1813_s11  ;;  %v487_v38 = vpop.permute.xlu2 %486  ;;  %v400_v5 = vadd.f32 %v395_v35, %v1996_v52  ;;  %v538_v35 = vmul.f32 %v369_v10, %v369_v10  ;;  %v370_v45 = vadd.f32 %v366_v36, %v362_v33 }
  0xad   : > { %v539_v0 = vmul.f32 %v370_v45, %v370_v45 }
  0xb0   : > { %v1733_v42 = vpop.eup %1732 }
  0xb1   : > { %v657_v47 = vrot.slane %v1733_v42, 7 }
  0xb2   : > { %v405_v48 = vpop.permute.xlu1 %404  ;;  %v403_v2 = vpop.permute.xlu0 %402 }
  0xb3   : > { %663 = vrot.lane.b32.xlu1 %v657_v47, %s1813_s11  ;;  %v523_v49 = vpop.permute.xlu2 %522  ;;  %v658_v50 = vsel %vm655_vm5, %v656_v34, %v657_v47  ;;  %v408_v9 = vadd.f32 %v403_v2, %v400_v5  ;;  %v409_v39 = vadd.f32 %v405_v48, %v401_v28 }
  0xb4   : > { %661 = vrot.lane.b32.xlu2 %v658_v50, %s1813_s11 }
  0xb5   : > { %v540_v19 = vmul.f32 %v408_v9, %v408_v9  ;;  %v541_v48 = vmul.f32 %v409_v39, %v409_v39 }
  0xb7   : > { %v564_v47 = vadd.f32 %v540_v19, %v538_v35 }
  0xba   : > { %v445_v53 = vpop.permute.xlu1 %444  ;;  %v439_v55 = vpop.permute.xlu0 %438 }
  0xbb   : > { %v2189_v56 = vpop.permute.xlu2 %707  ;;  %851 = vrot.lane.b32.xlu1 %v2187_v1, %s1810_s6  ;;  %v450_v25 = vadd.f32 %v445_v53, %v442_v61  ;;  %v443_v34 = vadd.f32 %v439_v55, %v2039_v37 }
  0xbc   : > { %v1102_v58 = vmul.f32 %v1100_v14, %v2189_v56  ;;  %v566_v14 = vadd.f32 0.0081, %v564_v47 }
  0xbd   : > { %v546_v17 = vmul.f32 9.0, %v450_v25  ;;  %v451_v42 = vadd.f32 %v2164_v8, %v443_v34 }
  0xbe   : > { %v1106_v43 = vrot.slane %v1102_v58, 1  ;;  %v565_v58 = vadd.f32 %v541_v48, %v539_v0 }
  0xbf   : > { %v548_v2 = vsub.f32 %v546_v17, %v538_v35  ;;  %v547_v8 = vmul.f32 9.0, %v451_v42 }
  0xc0   : > { %v567_v28 = vadd.f32 0.0081, %v565_v58 }
  0xc1   : > { %v549_v13 = vsub.f32 %v547_v8, %v539_v0 }
  0xc2   : > { %v481_v26 = vpop.permute.xlu1 %480  ;;  %v479_v27 = vpop.permute.xlu0 %478 }
  0xc3   : > { %v484_v20 = vadd.f32 %v479_v27, %v2062_v23  ;;  %v2206_v24 = vpop.permute.xlu2 %709  ;;  %859 = vrot.lane.b32.xlu1 %v2187_v1, %s1811_s10  ;;  %v2235_v27 = vld [vmem:[%s1915_s9 + $0x20] sm:$0xff] }
  0xc4   : > { %v2211_v32 = vmul.f32 %v2206_v24, %v701_v6  ;;  %v2214_v52 = vmul.f32 %v1101_v11, %v2206_v24  ;;  %v536_v6 = vmul.f32 %v408_v9, %v369_v10  ;;  %v868_v9 = vmul.f32 %v2235_v27, %v2235_v27 }
  0xc5   : > { %v492_v54 = vadd.f32 %v487_v38, %v484_v20  ;;  %v485_v38 = vadd.f32 %v481_v26, %v2060_v22  ;;  %v527_v22 = vadd.f32 %v523_v49, %v2077_v41  ;;  %v2232_v26 = vld [vmem:[%s1915_s9 + $0x18] sm:$0xff]  ;;  %v537_v41 = vmul.f32 %v409_v39, %v370_v45 }
  0xc6   : > { %v1107_v37 = vrot.slane %v2214_v52, 1  ;;  %v718_v23 = vrot.slane %v2211_v32, 1  ;;  %v867_v49 = vmul.f32 %v2232_v26, %v2232_v26  ;;  %v554_v35 = vadd.f32 %v536_v6, %v536_v6 }
  0xc7   : > { %v550_v44 = vmul.f32 9.0, %v492_v54 }
  0xc8   : > { %722 = vrot.lane.b32.xlu2 %v718_v23, %s1810_s6  ;;  %v2227_v51 = vsel %vm271_vm0, %v1106_v43, %v1107_v37  ;;  %v873_v33 = vrot.slane %v867_v49, 1  ;;  %v882_v39 = vrot.slane %v867_v49, 2 }
  0xc9   : > { %v552_v31 = vsub.f32 %v550_v44, %v540_v19 }
  0xca   : > { %v521_v12 = vpop.permute.xlu1 %520  ;;  %v489_v50 = vpop.permute.xlu0 %488 }
  0xcb   : > { %v568_v15 = vadd.f32 %v552_v31, %v548_v2  ;;  %v493_v36 = vadd.f32 %v489_v50, %v485_v38  ;;  %v526_v62 = vadd.f32 %v521_v12, %v2075_v40  ;;  %v771_v10 = vpop.permute.xlu2 %770  ;;  %v874_v2 = vrot.slane %v868_v9, 1  ;;  %v2242_v12 = vld [vmem:[%s1915_s9 + $0x28] sm:$0x3] }
  0xcc   : > { %v883_v31 = vrot.slane %v868_v9, 2  ;;  %v555_v50 = vadd.f32 %v537_v41, %v537_v41  ;;  %v869_v0 = vmul.f32 %v2242_v12, %v2242_v12 }
  0xcd   : > { %v570_v53 = vadd.f32 0.0729, %v568_v15  ;;  %v551_v55 = vmul.f32 9.0, %v493_v36  ;;  %v875_v36 = vsel %vm271_vm0, %v873_v33, %v874_v2 }
  0xcf   : > { %v572_v63 = vmul.f32 %v570_v53, %v566_v14  ;;  %v553_v61 = vsub.f32 %v551_v55, %v541_v48  ;;  %v556_v14 = vadd.f32 0.0081, %v554_v35 }
  0xd1   : > { %1734 = vrcp.f32 %v572_v63  ;;  %v569_v5 = vadd.f32 %v553_v61, %v549_v13  ;;  %v884_v61 = vsel %vm343_vm1, %v882_v39, %v883_v31  ;;  %v776_v39 = vadd.f32 %v771_v10, %v2122_v16 }
  0xd2   : > { %v531_v11 = vpop.permute.xlu1 %530  ;;  %v529_v25 = vpop.permute.xlu0 %528 }
  0xd3   : > { %v571_v34 = vadd.f32 0.0729, %v569_v5  ;;  %v535_v20 = vadd.f32 %v531_v11, %v527_v22  ;;  %v534_v19 = vadd.f32 %v529_v25, %v526_v62  ;;  %v876_v11 = vrot.slane %v869_v0, 1 }
  0xd5   : > { %v573_v17 = vmul.f32 %v571_v34, %v567_v28  ;;  %v543_v54 = vmul.f32 9.0, %v535_v20  ;;  %v542_v40 = vmul.f32 9.0, %v534_v19  ;;  %v2252_v34 = vpop.permute.xlu2 %772  ;;  %v557_v20 = vadd.f32 0.0081, %v555_v50 }
  0xd7   : > { %v1735_v43 = vpop.eup %1734  ;;  %1736 = vrcp.f32 %v573_v17  ;;  %v545_v42 = vsub.f32 %v543_v54, %v537_v41  ;;  %v544_v44 = vsub.f32 %v542_v40, %v536_v6  ;;  %v877_v41 = vsel %vm271_vm0, %v874_v2, %v876_v11 }
  0xd8   : > { %v576_v47 = vmul.f32 %v1735_v43, %v572_v63  ;;  %v880_v63 = vadd.f32 %v875_v36, %v867_v49  ;;  %v885_v54 = vrot.slane %v869_v0, 2  ;;  %v698_v49 = vsub.f32 %v1918_v7, %v1952_v21 }
  0xd9   : > { %v559_v45 = vadd.f32 %v545_v42, %v545_v42  ;;  %v558_v38 = vadd.f32 %v544_v44, %v544_v44  ;;  %v881_v42 = vadd.f32 %v877_v41, %v868_v9  ;;  %v909_v44 = vmul.f32 %v2232_v26, %v2105_v57 }
  0xda   : > { %v622_v48 = vpop.permute.xlu1 %621  ;;  %v620_v8 = vpop.permute.xlu0 %619  ;;  %v578_v15 = vsub.f32 2.0, %v576_v47  ;;  %v2250_v28 = vadd.f32 %v884_v61, %v880_v63  ;;  %v2265_v47 = vmul.f32 %v2235_v27, %v2108_v59  ;;  %v789_v63 = vrot.slane %v2232_v26, 1 }
  0xdb   : > { %v560_v53 = vadd.f32 0.0729, %v558_v38  ;;  %v626_v55 = vsel %vm299_vm3, %v622_v48, 0.0  ;;  %v625_v22 = vsel %vm299_vm3, %v620_v8, 0.0  ;;  %v561_v5 = vadd.f32 0.0729, %v559_v45 }
  0xdc   : > { %v627_v58 = vadd.f32 %v626_v55, %v625_v22  ;;  %v580_v13 = vmul.f32 %v1735_v43, %v578_v15  ;;  %893 = vrot.lane.b32.xlu1 %v2250_v28, %s1810_s6  ;;  %v886_v45 = vsel %vm343_vm1, %v883_v31, %v885_v54  ;;  %v915_v21 = vrot.slane %v909_v44, 1 }
  0xdd   : > { %v1737_v62 = vpop.eup %1736  ;;  %v562_v6 = vmul.f32 %v560_v53, %v556_v14  ;;  %v563_v33 = vmul.f32 %v561_v5, %v557_v20  ;;  %v916_v50 = vrot.slane %v2265_v47, 1  ;;  %v700_v48 = vand.u32 2147483647, %v698_v49  ;;  %v779_v36 = vpop.permute.xlu2 %778 }
  0xde   : > { %v577_v25 = vmul.f32 %v1737_v62, %v573_v17  ;;  %628 = vadd.xlane.f32.xlu0 %v627_v58  ;;  %v2270_v9 = vadd.f32 %v886_v45, %v881_v42  ;;  %v2272_v0 = vadd.f32 %v779_v36, %v776_v39  ;;  %v924_v53 = vrot.slane %v909_v44, 2 }
  0xdf   : > { %v582_v19 = vmul.f32 %v580_v13, %v562_v6  ;;  %v917_v14 = vsel %vm271_vm0, %v915_v21, %v916_v50  ;;  %v925_v55 = vrot.slane %v2265_v47, 2  ;;  %v713_v10 = vmul.f32 %v2189_v56, %v700_v48 }
  0xe0   : > { %v579_v40 = vsub.f32 2.0, %v577_v25  ;;  %v922_v13 = vadd.f32 %v917_v14, %v909_v44  ;;  %v790_v61 = vrot.slane %v2235_v27, 1  ;;  %v798_v54 = vrot.slane %v2232_v26, 2 }
  0xe1   : > { %v584_v43 = vsub.f32 1.0, %v582_v19  ;;  %v717_v6 = vrot.slane %v713_v10, 1  ;;  %v1021_v42 = vsub.f32 %v2235_v27, %v2108_v59 }
  0xe2   : > { %v581_v17 = vmul.f32 %v1737_v62, %v579_v40  ;;  %v2259_v35 = vpop.permute.xlu1 %638  ;;  %v926_v62 = vsel %vm343_vm1, %v924_v53, %v925_v55  ;;  %v791_v41 = vsel %vm271_vm0, %v789_v63, %v790_v61  ;;  %v799_v40 = vrot.slane %v2235_v27, 2 }
  0xe3   : > { %v586_v2 = vmul.f32 0.5, %v584_v43  ;;  %v2286_v20 = vadd.f32 %v926_v62, %v922_v13  ;;  %v719_v49 = vsel %vm271_vm0, %v717_v6, %v718_v23  ;;  %v1024_v39 = vand.u32 2147483647, %v1021_v42 }
  0xe4   : > { %v583_v38 = vmul.f32 %v581_v17, %v563_v33  ;;  %903 = vrot.lane.b32.xlu1 %v2270_v9, %s1811_s10  ;;  %v796_v33 = vadd.f32 %v2232_v26, %v791_v41  ;;  %v1020_v17 = vsub.f32 %v2232_v26, %v2105_v57  ;;  %v800_v44 = vsel %vm343_vm1, %v798_v54, %v799_v40 }
  0xe5   : > { %v588_v15 = vmax.f32 %v586_v2, 0.0  ;;  %v777_v23 = vadd.f32 %v2252_v34, %v2139_v29  ;;  %v801_v34 = vrot.slane %v2242_v12, 2  ;;  %v1022_v13 = vsub.f32 %v2242_v12, %v2125_v18 }
  0xe6   : > { %v585_v8 = vsub.f32 1.0, %v583_v38  ;;  %v1023_v2 = vand.u32 2147483647, %v1020_v17  ;;  %v2303_v45 = vadd.f32 %v800_v44, %v796_v33  ;;  %v1030_v38 = vrot.slane %v1024_v39, 1 }
  0xe7   : > { %v590_v22 = vmin.f32 %v588_v15, 1.0  ;;  %v792_v15 = vrot.slane %v2242_v12, 1 }
  0xe8   : > { %v587_v16 = vmul.f32 0.5, %v585_v8  ;;  %v1029_v32 = vrot.slane %v1023_v2, 1  ;;  %v911_v8 = vmul.f32 %v2242_v12, %v2125_v18  ;;  %v647_v12 = vsub.f32 %v1918_v7, %v2259_v35 }
  0xe9   : > { %v592_v11 = vsel %vm299_vm3, %v590_v22, 0.0  ;;  %v793_v29 = vsel %vm271_vm0, %v790_v61, %v792_v15  ;;  %v827_v61 = vmul.f32 %v2125_v18, %v2125_v18 }
  0xea   : > { %v589_v31 = vmax.f32 %v587_v16, 0.0  ;;  %v2279_v58 = vpop.permute.xlu1 %640  ;;  %v1031_v21 = vsel %vm271_vm0, %v1029_v32, %v1030_v38  ;;  %v918_v36 = vrot.slane %v911_v8, 1  ;;  %v927_v53 = vrot.slane %v911_v8, 2 }
  0xeb   : > { %v797_v16 = vadd.f32 %v2235_v27, %v793_v29  ;;  %v1025_v27 = vand.u32 2147483647, %v1022_v13  ;;  %v843_v6 = vrot.slane %v827_v61, 2  ;;  %v650_v54 = vand.u32 2147483647, %v647_v12 }
  0xec   : > { %v591_v5 = vmin.f32 %v589_v31, 1.0  ;;  %943 = vrot.lane.b32.xlu1 %v2286_v20, %s1811_s10  ;;  %v919_v14 = vsel %vm271_vm0, %v916_v50, %v918_v36  ;;  %v802_v31 = vsel %vm343_vm1, %v799_v40, %v801_v34  ;;  %v928_v22 = vsel %vm343_vm1, %v925_v55, %v927_v53 }
  0xed   : > { %v923_v10 = vadd.f32 %v919_v14, %v2265_v47  ;;  %v2331_v63 = vadd.f32 %v802_v31, %v797_v16  ;;  %v834_v47 = vrot.slane %v827_v61, 1  ;;  %v1032_v62 = vrot.slane %v1025_v27, 1 }
  0xee   : > { %v593_v25 = vsel %vm299_vm3, %v591_v5, 0.0  ;;  %v648_v55 = vsub.f32 %v1905_v3, %v2279_v58  ;;  %v844_v3 = vsel %vm343_vm1, %v841_v46, %v843_v6 }
  0xef   : > { %v594_v19 = vadd.f32 %v593_v25, %v592_v11  ;;  %v2333_v50 = vadd.f32 %v928_v22, %v923_v10  ;;  %v835_v5 = vsel %vm271_vm0, %v832_v60, %v834_v47  ;;  %v1033_v11 = vsel %vm271_vm0, %v1030_v38, %v1032_v62 }
  0xf0   : > { %v651_v25 = vand.u32 2147483647, %v648_v55  ;;  %v839_v41 = vadd.f32 %v835_v5, %v2171_v30 }
  0xf1   : > { %595 = vadd.xlane.f32.xlu2 %v594_v19 }
  0xf2   : > { %720 = vrot.lane.b32.xlu0 %v719_v49, %s1810_s6  ;;  %v643_v43 = vpop.permute.xlu1 %642  ;;  %v848_v35 = vadd.f32 %v844_v3, %v839_v41 }
  0xf3   : > { %v649_v30 = vsub.f32 %v1908_v4, %v643_v43 }
  0xf4   : > { %1034 = vrot.lane.b32.xlu1 %v1031_v21, %s1810_s6 }
  0xf5   : > { %v652_v46 = vand.u32 2147483647, %v649_v30 }
  0xfa   : > { %817 = vrot.lane.b32.xlu0 %v2303_v45, %s1811_s10  ;;  %v781_v26 = vpop.permute.xlu1 %780 }
  0xfb   : > { %v2311_v48 = vadd.f32 %v781_v26, %v777_v23 }
 0x102   : > { %895 = vrot.lane.b32.xlu0 %v2270_v9, %s1810_s6 }
 0x109   : > { %809 = vrot.lane.b32.xlu2 %v2303_v45, %s1810_s6 }
 0x10a   : > { %935 = vrot.lane.b32.xlu0 %v2286_v20, %s1810_s6 }
 0x10e   : > { %v2349_v19 = vpop.permute.xlu2 %661 }
 0x10f   : > { %v669_v7 = vmul.f32 %v2349_v19, %v651_v25 }
 0x111   : > { %811 = vrot.lane.b32.xlu2 %v2331_v63, %s1810_s6  ;;  %v675_v40 = vrot.slane %v669_v7, 1 }
 0x112   : > { %945 = vrot.lane.b32.xlu0 %v2333_v50, %s1811_s10 }
 0x119   : > { %819 = vrot.lane.b32.xlu2 %v2331_v63, %s1811_s10 }
 0x11a   : > { %1036 = vrot.lane.b32.xlu0 %v1033_v11, %s1810_s6 }
 0x11d   : > { %v2359_v60 = vpop.permute.xlu1 %659 }
 0x11e   : > { %v668_v58 = vmul.f32 %v2359_v60, %v650_v54 }
 0x120   : > { %v674_v49 = vrot.slane %v668_v58, 1 }
 0x121   : > { %853 = vrot.lane.b32.xlu2 %v848_v35, %s1810_s6 }
 0x122   : > { %1053 = vrot.lane.b32.xlu0 %v2105_v57, %s1810_s6  ;;  %v2366_v33 = vsel %vm271_vm0, %v674_v49, %v675_v40  ;;  %v2383_v39 = vpop.permute.xlu2 %722 }
 0x125   : > { %v2372_v17 = vpop.permute.xlu1 %663 }
 0x126   : > { %v670_v42 = vmul.f32 %v2372_v17, %v652_v46 }
 0x128   : > { %v677_v44 = vrot.slane %v670_v42, 1 }
 0x129   : > { %861 = vrot.lane.b32.xlu2 %v848_v35, %s1811_s10 }
 0x12a   : > { %1055 = vrot.lane.b32.xlu0 %v2108_v59, %s1810_s6  ;;  %v678_v2 = vsel %vm271_vm0, %v675_v40, %v677_v44 }
 0x12d   : > { %v852_v4 = vpop.permute.xlu1 %851 }
 0x12e   : > { %v857_v49 = vadd.f32 %v852_v4, %v2187_v1 }
 0x131   : > { %901 = vrot.lane.b32.xlu2 %v2250_v28, %s1811_s10 }
 0x132   : > { %1057 = vrot.lane.b32.xlu0 %v2125_v18, %s1810_s6 }
 0x135   : > { %v860_v23 = vpop.permute.xlu1 %859 }
 0x139   : > { %937 = vrot.lane.b32.xlu2 %v2333_v50, %s1810_s6 }
 0x13a   : > { %681 = vrot.lane.b32.xlu0 %v678_v2, %s1810_s6 }
 0x14e   : > { %v894_v14 = vpop.permute.xlu1 %893 }
 0x151   : > { %v629_v43 = vpop.xlane.xlu0 %628 }
 0x152   : > { %v630_v32 = vrot.slane %v629_v43, 4 }
 0x154   : > { %v631_v38 = vadd.f32 %v630_v32, %v629_v43 }
 0x156   : > { %v632_v21 = vrot.slane %v631_v38, 2  ;;  %v904_v62 = vpop.permute.xlu1 %903 }
 0x158   : > { %v633_v29 = vadd.f32 %v632_v21, %v631_v38  ;;  %v899_v21 = vadd.f32 %v894_v14, %v2250_v28 }
 0x15a   : > { %v634_v31 = vrot.slane %v633_v29, 1 }
 0x15c   : > { %v635_v61 = vadd.f32 %v634_v31, %v633_v29 }
 0x15e   : > { %v944_v5 = vpop.permute.xlu1 %943 }
 0x164   : > { %v596_v26 = vpop.xlane.xlu2 %595  ;;  %v2385_v8 = vpop.permute.xlu0 %720 }
 0x165   : > { %v597_v15 = vrot.slane %v596_v26, 4 }
 0x166   : > { %v1035_v54 = vpop.permute.xlu1 %1034 }
 0x167   : > { %v598_v36 = vadd.f32 %v597_v15, %v596_v26  ;;  %v1040_v40 = vsel %vm299_vm3, %v1035_v54, 0.0 }
 0x169   : > { %v599_v34 = vrot.slane %v598_v36, 2 }
 0x16b   : > { %v600_v53 = vadd.f32 %v599_v34, %v598_v36 }
 0x16c   : > { %v810_v16 = vpop.permute.xlu2 %809  ;;  %v818_v10 = vpop.permute.xlu0 %817 }
 0x16d   : > { %v601_v22 = vrot.slane %v600_v53, 1  ;;  %v815_v42 = vadd.f32 %v810_v16, %v2303_v45  ;;  %v953_v45 = vmul.f32 %v2272_v0, %v2272_v0 }
 0x16f   : > { %v602_v13 = vadd.f32 %v601_v22, %v600_v53  ;;  %v823_v26 = vadd.f32 %v818_v10, %v815_v42 }
 0x171   : > { %1657 = vpush %v602_v13  ;;  %v955_v31 = vmul.f32 %v823_v26, %v823_v26 }
 0x172   : > { %1659 = vpush %v635_v61 }
 0x174   : > { %v812_v27 = vpop.permute.xlu2 %811  ;;  %v896_v47 = vpop.permute.xlu0 %895 }
 0x175   : > { %v816_v25 = vadd.f32 %v812_v27, %v2331_v63  ;;  %v900_v41 = vadd.f32 %v896_v47, %v2270_v9  ;;  %v954_v9 = vmul.f32 %v2311_v48, %v2311_v48  ;;  %v979_v47 = vadd.f32 %v955_v31, %v953_v45 }
 0x177   : > { %v908_v58 = vadd.f32 %v904_v62, %v900_v41 }
 0x179   : > { %v966_v63 = vmul.f32 9.0, %v908_v58 }
 0x17c   : > { %v820_v55 = vpop.permute.xlu2 %819  ;;  %v936_v12 = vpop.permute.xlu0 %935 }
 0x17d   : > { %v824_v3 = vadd.f32 %v820_v55, %v816_v25  ;;  %v941_v34 = vadd.f32 %v936_v12, %v2286_v20  ;;  %v981_v12 = vadd.f32 0.0081, %v979_v47 }
 0x17f   : > { %v956_v44 = vmul.f32 %v824_v3, %v824_v3  ;;  %v949_v10 = vadd.f32 %v944_v5, %v941_v34 }
 0x181   : > { %v968_v1 = vsub.f32 %v966_v63, %v956_v44  ;;  %v980_v4 = vadd.f32 %v956_v44, %v954_v9  ;;  %v957_v25 = vmul.f32 9.0, %v949_v10 }
 0x183   : > { %v982_v22 = vadd.f32 0.0081, %v980_v4 }
 0x184   : > { %v854_v6 = vpop.permute.xlu2 %853  ;;  %v946_v11 = vpop.permute.xlu0 %945 }
 0x185   : > { %v858_v7 = vadd.f32 %v854_v6, %v848_v35  ;;  %v865_v35 = vadd.f32 %v860_v23, %v857_v49 }
 0x187   : > { %v961_v29 = vmul.f32 9.0, %v865_v35 }
 0x189   : > { %v963_v27 = vsub.f32 %v961_v29, %v953_v45 }
 0x18c   : > { %v862_v30 = vpop.permute.xlu2 %861  ;;  %v1037_v46 = vpop.permute.xlu0 %1036 }
 0x18d   : > { %v866_v2 = vadd.f32 %v862_v30, %v858_v7  ;;  %v1041_v43 = vsel %vm299_vm3, %v1037_v46, 0.0 }
 0x18e   : > { %v1042_v32 = vadd.f32 %v1041_v43, %v1040_v40  ;;  %v951_v40 = vmul.f32 %v823_v26, %v2272_v0 }
 0x18f   : > { %v962_v38 = vmul.f32 9.0, %v866_v2 }
 0x190   : > { %1043 = vadd.xlane.f32.xlu1 %v1042_v32  ;;  %v959_v44 = vsub.f32 %v957_v25, %v951_v40 }
 0x191   : > { %v964_v15 = vsub.f32 %v962_v38, %v954_v9  ;;  %v2410_v38 = vld [vmem:[%s1892_s5 + $0x40] sm:$0x3] }
 0x192   : > { %v973_v63 = vadd.f32 %v959_v44, %v959_v44 }
 0x193   : > { %v984_v36 = vadd.f32 %v968_v1, %v964_v15  ;;  %v969_v1 = vadd.f32 %v951_v40, %v951_v40  ;;  %v1216_v15 = vmul.f32 %v2410_v38, %v2410_v38 }
 0x194   : > { %v902_v53 = vpop.permute.xlu2 %901  ;;  %v1054_v16 = vpop.permute.xlu0 %1053 }
 0x195   : > { %v986_v13 = vadd.f32 0.0729, %v984_v36  ;;  %v907_v23 = vadd.f32 %v902_v53, %v899_v21  ;;  %v1062_v14 = vsub.f32 %v2105_v57, %v1054_v16  ;;  %v952_v57 = vmul.f32 %v824_v3, %v2311_v48  ;;  %v2407_v3 = vld [vmem:[%s1892_s5 + $0x38] sm:$0xff] }
 0x196   : > { %v2417_v4 = vmul.f32 %v2407_v3, %v2407_v3  ;;  %v975_v53 = vadd.f32 0.0729, %v973_v63  ;;  %v1232_v25 = vrot.slane %v1216_v15, 2 }
 0x197   : > { %v988_v61 = vmul.f32 %v986_v13, %v982_v22  ;;  %v965_v28 = vmul.f32 9.0, %v907_v23  ;;  %v1065_v6 = vand.u32 2147483647, %v1062_v14  ;;  %v970_v32 = vadd.f32 %v952_v57, %v952_v57 }
 0x198   : > { %v971_v13 = vadd.f32 0.0081, %v969_v1 }
 0x199   : > { %1738 = vrcp.f32 %v988_v61  ;;  %v967_v62 = vsub.f32 %v965_v28, %v955_v31  ;;  %v1068_v30 = vmul.f32 %v1065_v6, %v2359_v60  ;;  %v972_v45 = vadd.f32 0.0081, %v970_v32  ;;  %v2448_v32 = vld [vmem:[%s1915_s9 + $0x40] sm:$0x3] }
 0x19a   : > { %v1223_v28 = vrot.slane %v1216_v15, 1  ;;  %v977_v10 = vmul.f32 %v975_v53, %v971_v13  ;;  %v1230_v6 = vrot.slane %v2417_v4, 2 }
 0x19b   : > { %v983_v55 = vadd.f32 %v967_v62, %v963_v27 }
 0x19c   : > { %v938_v41 = vpop.permute.xlu2 %937  ;;  %v1056_v20 = vpop.permute.xlu0 %1055  ;;  %v1233_v40 = vsel %vm343_vm1, %v1230_v6, %v1232_v25  ;;  %v726_v25 = vsel %vm299_vm3, %v2385_v8, 0.0 }
 0x19d   : > { %v985_v54 = vadd.f32 0.0729, %v983_v55  ;;  %v942_v7 = vadd.f32 %v938_v41, %v2333_v50  ;;  %v1063_v58 = vsub.f32 %v2108_v59, %v1056_v20  ;;  %v1074_v59 = vrot.slane %v1068_v30, 1 }
 0x19f   : > { %v1739_v5 = vpop.eup %1738  ;;  %v987_v49 = vmul.f32 %v985_v54, %v981_v12  ;;  %v950_v46 = vadd.f32 %v946_v11, %v942_v7  ;;  %v1066_v42 = vand.u32 2147483647, %v1063_v58  ;;  %v2431_v54 = vld [vmem:[%s1892_s5 + $0x30] sm:$0xff] }
 0x1a0   : > { %v992_v2 = vmul.f32 %v1739_v5, %v988_v61  ;;  %v1221_v61 = vrot.slane %v2417_v4, 1 }
 0x1a1   : > { %1740 = vrcp.f32 %v987_v49  ;;  %v958_v43 = vmul.f32 9.0, %v950_v46  ;;  %v1069_v50 = vmul.f32 %v1066_v42, %v2349_v19 }
 0x1a2   : > { %v994_v35 = vsub.f32 2.0, %v992_v2  ;;  %v1224_v55 = vsel %vm271_vm0, %v1221_v61, %v1223_v28  ;;  %v1148_v2 = vrot.slane %v2431_v54, 2  ;;  %s1658_s17 = spop %1657 }
 0x1a3   : > { %v960_v9 = vsub.f32 %v958_v43, %v952_v57  ;;  %v1075_v0 = vrot.slane %v1069_v50, 1  ;;  %v1228_v7 = vadd.f32 %v1224_v55, %v2417_v4  ;;  %v1149_v43 = vrot.slane %v2407_v3, 2  ;;  %v2445_v50 = vld [vmem:[%s1915_s9 + $0x38] sm:$0xff]  ;;  %s1660_s19 = spop %1659 }
 0x1a4   : > { %v1058_v48 = vpop.permute.xlu0 %1057  ;;  %v996_v22 = vmul.f32 %v1739_v5, %v994_v35  ;;  %v1139_v5 = vrot.slane %v2431_v54, 1 }
 0x1a5   : > { %v974_v21 = vadd.f32 %v960_v9, %v960_v9  ;;  %v1064_v11 = vsub.f32 %v2125_v18, %v1058_v48  ;;  %v1076_v26 = vsel %vm271_vm0, %v1074_v59, %v1075_v0  ;;  %v2440_v42 = vadd.f32 %v1233_v40, %v1228_v7 }
 0x1a6   : > { %1079 = vrot.lane.b32.xlu0 %v1076_v26, %s1810_s6  ;;  %v1150_v35 = vsel %vm343_vm1, %v1148_v2, %v1149_v43  ;;  %v2463_v26 = vld [vmem:[%s1915_s9 + $0x30] sm:$0xff] }
 0x1a7   : > { %v1741_v36 = vpop.eup %1740  ;;  %v976_v29 = vadd.f32 0.0729, %v974_v21  ;;  %v1067_v34 = vand.u32 2147483647, %v1064_v11  ;;  %v1179_v21 = vrot.slane %v2445_v50, 1  ;;  %v1181_v11 = vrot.slane %v2448_v32, 1 }
 0x1a8   : > { %v991_v16 = vmul.f32 %v1741_v36, %v987_v49  ;;  %v1140_v49 = vrot.slane %v2407_v3, 1  ;;  %v1256_v15 = vmul.f32 %v2463_v26, %v2463_v26  ;;  %v1298_v4 = vmul.f32 %v2463_v26, %v2431_v54 }
 0x1a9   : > { %v978_v31 = vmul.f32 %v976_v29, %v972_v45  ;;  %v1070_v18 = vmul.f32 %v1067_v34, %v2372_v17  ;;  %679 = vrot.lane.b32.xlu1 %v2366_v33, %s1810_s6  ;;  %v1182_v45 = vsel %vm271_vm0, %v1179_v21, %v1181_v11  ;;  %v1188_v29 = vrot.slane %v2445_v50, 2 }
 0x1aa   : > { %v993_v23 = vsub.f32 2.0, %v991_v16  ;;  %v2451_v59 = vsel %vm271_vm0, %v1139_v5, %v1140_v49  ;;  %v1190_v34 = vrot.slane %v2448_v32, 2  ;;  %v1186_v53 = vadd.f32 %v2445_v50, %v1182_v45 }
 0x1ab   : > { %v998_v14 = vmul.f32 %v996_v22, %v978_v31  ;;  %v1077_v27 = vrot.slane %v1070_v18, 1  ;;  %v1146_v48 = vadd.f32 %v2431_v54, %v2451_v59  ;;  %v1262_v16 = vrot.slane %v1256_v15, 1 }
 0x1ac   : > { %v995_v47 = vmul.f32 %v1741_v36, %v993_v23  ;;  %v2471_v36 = vmul.f32 %v2445_v50, %v2445_v50  ;;  %v1191_v18 = vsel %vm343_vm1, %v1188_v29, %v1190_v34  ;;  %v1271_v23 = vrot.slane %v1256_v15, 2 }
 0x1ad   : > { %v1000_v62 = vsub.f32 1.0, %v998_v14  ;;  %v1078_v20 = vsel %vm271_vm0, %v1075_v0, %v1077_v27  ;;  %v2465_v1 = vadd.f32 %v1150_v35, %v1146_v48  ;;  %v2485_v22 = vadd.f32 %v1191_v18, %v1186_v53 }
 0x1ae   : > { %v997_v33 = vmul.f32 %v995_v47, %v977_v10  ;;  %v1263_v31 = vrot.slane %v2471_v36, 1  ;;  %v1272_v28 = vrot.slane %v2471_v36, 2  ;;  %v2493_v14 = vmul.f32 %v2445_v50, %v2407_v3 }
 0x1af   : > { %v1002_v41 = vmul.f32 0.5, %v1000_v62  ;;  %v1300_v10 = vmul.f32 %v2448_v32, %v2410_v38 }
 0x1b0   : > { %v999_v12 = vsub.f32 1.0, %v997_v33  ;;  %v1264_v13 = vsel %vm271_vm0, %v1262_v16, %v1263_v31  ;;  %v1273_v47 = vsel %vm343_vm1, %v1271_v23, %v1272_v28  ;;  %v1305_v62 = vrot.slane %v2493_v14, 1 }
 0x1b1   : > { %1081 = vrot.lane.b32.xlu1 %v1078_v20, %s1810_s6  ;;  %v1004_v58 = vmax.f32 %v1002_v41, 0.0  ;;  %v1269_v27 = vadd.f32 %v1264_v13, %v1256_v15  ;;  %v1307_v55 = vrot.slane %v1300_v10, 1  ;;  %v1142_v33 = vrot.slane %v2410_v38, 1 }
 0x1b2   : > { %v1001_v57 = vmul.f32 0.5, %v999_v12  ;;  %v727_v41 = vsel %vm305_vm2, %v2383_v39, 0.0  ;;  %v1316_v40 = vrot.slane %v1300_v10, 2 }
 0x1b3   : > { %v1006_v46 = vmin.f32 %v1004_v58, 1.0  ;;  %v2508_v20 = vadd.f32 %v1273_v47, %v1269_v27  ;;  %v728_v12 = vadd.f32 %v727_v41, %v726_v25  ;;  %v1308_v7 = vsel %vm271_vm0, %v1305_v62, %v1307_v55 }
 0x1b4   : > { %v1003_v30 = vmax.f32 %v1001_v57, 0.0  ;;  %v1314_v58 = vrot.slane %v2493_v14, 2  ;;  %v1151_v57 = vrot.slane %v2410_v38, 2  ;;  %v1312_v8 = vadd.f32 %v1308_v7, %v2493_v14  ;;  %v682_v14 = vpop.permute.xlu0 %681 }
 0x1b5   : > { %v1008_v0 = vsel %vm299_vm3, %v1006_v46, 0.0  ;;  %v1143_v39 = vsel %vm271_vm0, %v1140_v49, %v1142_v33  ;;  %v1410_v49 = vsub.f32 %v2445_v50, %v2407_v3  ;;  %v1258_v27 = vmul.f32 %v2448_v32, %v2448_v32 }
 0x1b6   : > { %v1005_v44 = vmin.f32 %v1003_v30, 1.0  ;;  %v1317_v5 = vsel %vm343_vm1, %v1314_v58, %v1316_v40  ;;  %v1147_v30 = vadd.f32 %v2407_v3, %v1143_v39  ;;  %v1152_v46 = vsel %vm343_vm1, %v1149_v43, %v1151_v57 }
 0x1b7   : > { %v1487_v43 = vsub.f32 %v2431_v54, %v2451_v59  ;;  %v1488_v48 = vsub.f32 %v2407_v3, %v1143_v39  ;;  %v1187_v55 = vrot.slane %v2463_v26, 2  ;;  %v1265_v33 = vrot.slane %v1258_v27, 1 }
 0x1b8   : > { %v1007_v9 = vsel %vm299_vm3, %v1005_v44, 0.0  ;;  %v2526_v44 = vadd.f32 %v1317_v5, %v1312_v8  ;;  %v2528_v2 = vadd.f32 %v1152_v46, %v1147_v30  ;;  %v1274_v40 = vrot.slane %v1258_v27, 2 }
 0x1b9   : > { %1242 = vrot.lane.b32.xlu1 %v2440_v42, %s1810_s6  ;;  %v1009_v63 = vadd.f32 %v1008_v0, %v1007_v9  ;;  %v1411_v9 = vsub.f32 %v2448_v32, %v2410_v38  ;;  %v2538_v0 = vand.u32 2147483647, %v1410_v49  ;;  %v1489_v15 = vand.u32 2147483647, %v1487_v43 }
 0x1ba   : > { %v1490_v45 = vand.u32 2147483647, %v1488_v48  ;;  %v1266_v7 = vsel %vm271_vm0, %v1263_v31, %v1265_v33  ;;  %v1275_v50 = vsel %vm343_vm1, %v1272_v28, %v1274_v40  ;;  %v1313_v8 = vrot.slane %v1298_v4, 2 }
 0x1bb   : > { %1010 = vadd.xlane.f32.xlu2 %v1009_v63  ;;  %v1414_v63 = vand.u32 2147483647, %v1411_v9  ;;  %v1419_v35 = vrot.slane %v2538_v0, 1  ;;  %v1491_v34 = vmul.f32 %v1489_v15, %v2189_v56  ;;  %v1178_v56 = vrot.slane %v2463_v26, 1 }
 0x1bc   : > { %v2555_v53 = vmul.f32 %v1490_v45, %v2206_v24 }
 0x1bd   : > { %v1421_v11 = vrot.slane %v1414_v63, 1  ;;  %v1495_v16 = vrot.slane %v1491_v34, 1  ;;  %v1180_v47 = vsel %vm271_vm0, %v1178_v56, %v1179_v21  ;;  %v1189_v21 = vsel %vm343_vm1, %v1187_v55, %v1188_v29 }
 0x1be   : > { %v1496_v18 = vrot.slane %v2555_v53, 1  ;;  %v1185_v32 = vadd.f32 %v2463_v26, %v1180_v47  ;;  %v1304_v29 = vrot.slane %v1298_v4, 1 }
 0x1bf   : > { %v1422_v59 = vsel %vm271_vm0, %v1419_v35, %v1421_v11 }
 0x1c0   : > { %v1497_v24 = vsel %vm271_vm0, %v1495_v16, %v1496_v18  ;;  %v1306_v31 = vsel %vm271_vm0, %v1304_v29, %v1305_v62 }
 0x1c1   : > { %1167 = vrot.lane.b32.xlu1 %v2465_v1, %s1811_s10  ;;  %v1311_v39 = vadd.f32 %v1306_v31, %v1298_v4 }
 0x1c9   : > { %1208 = vrot.lane.b32.xlu1 %v2485_v22, %s1811_s10 }
 0x1d0   : > { %729 = vadd.xlane.f32.xlu0 %v728_v12  ;;  %v2592_v12 = vadd.f32 %v1189_v21, %v1185_v32 }
 0x1d1   : > { %1290 = vrot.lane.b32.xlu1 %v2508_v20, %s1811_s10 }
 0x1d3   : > { %1442 = vrot.lane.b32.xlu2 %v2431_v54, %s1810_s6 }
 0x1d9   : > { %1326 = vrot.lane.b32.xlu1 %v2526_v44, %s1810_s6 }
 0x1db   : > { %1161 = vrot.lane.b32.xlu2 %v2528_v2, %s1810_s6 }
 0x1e1   : > { %1109 = vrot.lane.b32.xlu1 %v2227_v51, %s1810_s6  ;;  %v1214_v51 = vmul.f32 %v2431_v54, %v2431_v54 }
 0x1e3   : > { %1200 = vrot.lane.b32.xlu2 %v2485_v22, %s1810_s6  ;;  %v1220_v13 = vrot.slane %v1214_v51, 1  ;;  %v1229_v10 = vrot.slane %v1214_v51, 2 }
 0x1e4   : > { %1444 = vrot.lane.b32.xlu0 %v2407_v3, %s1810_s6 }
 0x1e5   : > { %v1222_v23 = vsel %vm271_vm0, %v1220_v13, %v1221_v61  ;;  %v1231_v61 = vsel %vm343_vm1, %v1229_v10, %v1230_v6  ;;  %v1270_v6 = vadd.f32 %v1266_v7, %v2471_v36  ;;  %v1315_v36 = vsel %vm343_vm1, %v1313_v8, %v1314_v58 }
 0x1e6   : > { %v1227_v25 = vadd.f32 %v1222_v23, %v1214_v51  ;;  %v2619_v28 = vadd.f32 %v1315_v36, %v1311_v39  ;;  %v686_v58 = vsel %vm251_vm6, %v682_v14, 0.0 }
 0x1e7   : > { %v2607_v57 = vadd.f32 %v1275_v50, %v1270_v6 }
 0x1e8   : > { %v2590_v41 = vadd.f32 %v1231_v61, %v1227_v25 }
 0x1e9   : > { %1425 = vrot.lane.b32.xlu1 %v1422_v59, %s1810_s6 }
 0x1eb   : > { %1282 = vrot.lane.b32.xlu2 %v2508_v20, %s1810_s6 }
 0x1ec   : > { %1446 = vrot.lane.b32.xlu0 %v2410_v38, %s1810_s6 }
 0x1f1   : > { %1498 = vrot.lane.b32.xlu1 %v1497_v24, %s1810_s6 }
 0x1f3   : > { %1169 = vrot.lane.b32.xlu2 %v2528_v2, %s1811_s10 }
 0x1f4   : > { %1159 = vrot.lane.b32.xlu0 %v2465_v1, %s1810_s6 }
 0x1fb   : > { %1248 = vrot.lane.b32.xlu2 %v2590_v41, %s1811_s10 }
 0x1fc   : > { %1198 = vrot.lane.b32.xlu0 %v2592_v12, %s1810_s6 }
 0x203   : > { %1292 = vrot.lane.b32.xlu2 %v2607_v57, %s1811_s10  ;;  %v2625_v62 = vpop.xlane.xlu1 %1043 }
 0x204   : > { %1240 = vrot.lane.b32.xlu0 %v2590_v41, %s1810_s6 }
 0x20b   : > { %1332 = vrot.lane.b32.xlu2 %v2619_v28, %s1811_s10 }
 0x20c   : > { %1284 = vrot.lane.b32.xlu0 %v2607_v57, %s1810_s6 }
 0x213   : > { %1111 = vrot.lane.b32.xlu2 %v1107_v37, %s1810_s6  ;;  %v1409_v37 = vsub.f32 %v2463_v26, %v2431_v54 }
 0x214   : > { %1206 = vrot.lane.b32.xlu0 %v2592_v12, %s1811_s10 }
 0x215   : > { %v1412_v48 = vand.u32 2147483647, %v1409_v37 }
 0x217   : > { %v1418_v11 = vrot.slane %v1412_v48, 1 }
 0x218   : > { %v1080_v49 = vpop.permute.xlu0 %1079 }
 0x219   : > { %v1085_v63 = vsel %vm251_vm6, %v1080_v49, 0.0  ;;  %v1420_v45 = vsel %vm271_vm0, %v1418_v11, %v1419_v35 }
 0x21b   : > { %v680_v5 = vpop.permute.xlu1 %679 }
 0x21c   : > { %v685_v30 = vsel %vm251_vm6, %v680_v5, 0.0  ;;  %1250 = vrot.lane.b32.xlu0 %v2440_v42, %s1811_s10 }
 0x21d   : > { %v687_v46 = vadd.f32 %v686_v58, %v685_v30 }
 0x21f   : > { %688 = vadd.xlane.f32.xlu1 %v687_v46 }
 0x223   : > { %v1082_v9 = vpop.permute.xlu1 %1081 }
 0x224   : > { %v1086_v52 = vsel %vm251_vm6, %v1082_v9, 0.0  ;;  %1324 = vrot.lane.b32.xlu0 %v2619_v28, %s1810_s6 }
 0x225   : > { %v2642_v43 = vadd.f32 %v1086_v52, %v1085_v63 }
 0x22b   : > { %v2652_v34 = vpop.permute.xlu1 %1242 }
 0x22c   : > { %1334 = vrot.lane.b32.xlu0 %v2526_v44, %s1811_s10 }
 0x22e   : > { %v2646_v15 = vpop.xlane.xlu2 %1010 }
 0x233   : > { %v1168_v16 = vpop.permute.xlu1 %1167 }
 0x234   : > { %1423 = vrot.lane.b32.xlu0 %v1420_v45, %s1810_s6 }
 0x236   : > { %v1443_v59 = vpop.permute.xlu2 %1442 }
 0x237   : > { %v1451_v23 = vsub.f32 %v2431_v54, %v1443_v59 }
 0x239   : > { %v1454_v35 = vand.u32 2147483647, %v1451_v23 }
 0x23b   : > { %v1209_v10 = vpop.permute.xlu1 %1208  ;;  %v1457_v33 = vmul.f32 %v1454_v35, %v2359_v60 }
 0x23d   : > { %v1463_v40 = vrot.slane %v1457_v33, 1 }
 0x23e   : > { %v1162_v51 = vpop.permute.xlu2 %1161 }
 0x23f   : > { %v1166_v0 = vadd.f32 %v1162_v51, %v2528_v2 }
 0x243   : > { %v2654_v13 = vpop.xlane.xlu0 %729  ;;  %v1291_v60 = vpop.permute.xlu1 %1290 }
 0x246   : > { %v1201_v26 = vpop.permute.xlu2 %1200 }
 0x247   : > { %v1205_v24 = vadd.f32 %v1201_v26, %v2485_v22 }
 0x249   : > { %v1213_v27 = vadd.f32 %v1209_v10, %v1205_v24 }
 0x24b   : > { %v2659_v25 = vmul.f32 %v1213_v27, %v1213_v27 }
 0x24e   : > { %v1283_v56 = vpop.permute.xlu2 %1282 }
 0x24f   : > { %v1288_v37 = vadd.f32 %v1283_v56, %v2508_v20  ;;  %v731_v20 = vrot.slane %v2654_v13, 4 }
 0x251   : > { %v1296_v59 = vadd.f32 %v1291_v60, %v1288_v37 }
 0x256   : > { %v1170_v47 = vpop.permute.xlu2 %1169  ;;  %v1445_v55 = vpop.permute.xlu0 %1444 }
 0x257   : > { %v1174_v61 = vadd.f32 %v1170_v47, %v1166_v0  ;;  %v1452_v32 = vsub.f32 %v2407_v3, %v1445_v55  ;;  %v1354_v0 = vmul.f32 9.0, %v1296_v59  ;;  %v1012_v47 = vrot.slane %v2646_v15, 4 }
 0x259   : > { %v2663_v21 = vmul.f32 %v1213_v27, %v1174_v61  ;;  %v2665_v7 = vmul.f32 %v1174_v61, %v1174_v61  ;;  %v1455_v22 = vand.u32 2147483647, %v1452_v32  ;;  %v1045_v61 = vrot.slane %v2625_v62, 4 }
 0x25a   : > { %v1013_v33 = vadd.f32 %v1012_v47, %v2646_v15 }
 0x25b   : > { %v2669_v54 = vadd.f32 %v2659_v25, %v2665_v7  ;;  %v1458_v2 = vmul.f32 %v1455_v22, %v2349_v19  ;;  %v2681_v19 = vpop.permute.xlu1 %1326  ;;  %v732_v22 = vadd.f32 %v731_v20, %v2654_v13  ;;  %v1359_v47 = vadd.f32 %v2663_v21, %v2663_v21 }
 0x25d   : > { %v1464_v4 = vrot.slane %v1458_v2, 1  ;;  %v733_v60 = vrot.slane %v732_v22, 2 }
 0x25e   : > { %v1249_v6 = vpop.permute.xlu2 %1248  ;;  %v1447_v50 = vpop.permute.xlu0 %1446 }
 0x25f   : > { %v1453_v29 = vsub.f32 %v2410_v38, %v1447_v50  ;;  %v1465_v3 = vsel %vm271_vm0, %v1463_v40, %v1464_v4  ;;  %v1046_v50 = vadd.f32 %v1045_v61, %v2625_v62  ;;  %v1371_v62 = vadd.f32 0.0081, %v2669_v54 }
 0x260   : > { %1468 = vrot.lane.b32.xlu2 %v1465_v3, %s1810_s6 }
 0x261   : > { %v1456_v31 = vand.u32 2147483647, %v1453_v29  ;;  %v1047_v13 = vrot.slane %v1046_v50, 2 }
 0x263   : > { %v1459_v8 = vmul.f32 %v1456_v31, %v2372_v17  ;;  %v1110_v30 = vpop.permute.xlu1 %1109 }
 0x264   : > { %v1115_v17 = vsel %vm299_vm3, %v1110_v30, 0.0 }
 0x265   : > { %v1466_v39 = vrot.slane %v1459_v8, 1 }
 0x266   : > { %v1293_v36 = vpop.permute.xlu2 %1292  ;;  %v1160_v14 = vpop.permute.xlu0 %1159 }
 0x267   : > { %v1467_v5 = vsel %vm271_vm0, %v1464_v4, %v1466_v39  ;;  %v1165_v52 = vadd.f32 %v1160_v14, %v2465_v1 }
 0x268   : > { %1500 = vrot.lane.b32.xlu2 %v1496_v18, %s1810_s6  ;;  %1470 = vrot.lane.b32.xlu0 %v1467_v5, %s1810_s6  ;;  %v734_v5 = vadd.f32 %v733_v60, %v732_v22  ;;  %v1361_v22 = vadd.f32 0.0081, %v1359_v47  ;;  %s1652_s6 = sshll.u32 %s1855_s16, 3  ;;  %s193_s16 = scalar_lea.vmem [#allocation2], %s2728_s4 }
 0x269   : > { %v1173_v11 = vadd.f32 %v1168_v16, %v1165_v52  ;;  %v1247_v16 = vadd.f32 %v2652_v34, %v2440_v42  ;;  %v1014_v34 = vrot.slane %v1013_v33, 2  ;;  %v1331_v52 = vadd.f32 %v2681_v19, %v2526_v44  ;;  %s1543_s1 = scalar_lea.hbm %s2767_s3, %s1652_s6 }
 0x26b   : > { %v2690_v48 = vpop.permute.xlu1 %1425  ;;  %v1342_v26 = vmul.f32 %v1173_v11, %v1173_v11 }
 0x26e   : > { %v2683_v38 = vpop.permute.xlu2 %1332  ;;  %v1199_v58 = vpop.permute.xlu0 %1198 }
 0x26f   : > { %v1204_v51 = vadd.f32 %v1199_v58, %v2592_v12  ;;  %v1015_v58 = vadd.f32 %v1014_v34, %v1013_v33 }
 0x273   : > { %v2696_v56 = vpop.permute.xlu1 %1498 }
 0x276   : > { %v1112_v46 = vpop.permute.xlu2 %1111  ;;  %v1241_v49 = vpop.permute.xlu0 %1240 }
 0x277   : > { %v1116_v9 = vsel %vm305_vm2, %v1112_v46, 0.0  ;;  %v1246_v53 = vadd.f32 %v1241_v49, %v2590_v41  ;;  %v1048_v49 = vadd.f32 %v1047_v13, %v1046_v50 }
 0x278   : > { %v1117_v63 = vadd.f32 %v1116_v9, %v1115_v17 }
 0x279   : > { %v1254_v45 = vadd.f32 %v1249_v6, %v1246_v53  ;;  %v735_v53 = vrot.slane %v734_v5, 1  ;;  %v1049_v59 = vrot.slane %v1048_v49, 1 }
 0x27a   : > { %1118 = vadd.xlane.f32.xlu1 %v1117_v63 }
 0x27b   : > { %v1350_v24 = vmul.f32 9.0, %v1254_v45 }
 0x27d   : > { %v1352_v1 = vsub.f32 %v1350_v24, %v1342_v26 }
 0x27e   : > { %v1285_v18 = vpop.permute.xlu0 %1284 }
 0x27f   : > { %v1289_v23 = vadd.f32 %v1285_v18, %v2607_v57  ;;  %v1016_v18 = vrot.slane %v1015_v58, 1 }
 0x281   : > { %v1297_v35 = vadd.f32 %v1293_v36, %v1289_v23  ;;  %v736_v23 = vadd.f32 %v735_v53, %v734_v5  ;;  %v1504_v5 = vsel %vm299_vm3, %v2696_v56, 0.0 }
 0x283   : > { %v1355_v57 = vmul.f32 9.0, %v1297_v35 }
 0x285   : > { %v1357_v29 = vsub.f32 %v1355_v57, %v2659_v25 }
 0x286   : > { %v1207_v10 = vpop.permute.xlu0 %1206 }
 0x287   : > { %v1212_v27 = vadd.f32 %v1207_v10, %v1204_v51 }
 0x289   : > { %v1344_v41 = vmul.f32 %v1212_v27, %v1212_v27  ;;  %v1340_v9 = vmul.f32 %v1212_v27, %v1173_v11  ;;  %v1050_v27 = vadd.f32 %v1049_v59, %v1048_v49 }
 0x28b   : > { %v1356_v12 = vsub.f32 %v1354_v0, %v1344_v41  ;;  %v1368_v55 = vadd.f32 %v1344_v41, %v1342_v26  ;;  %v1358_v51 = vadd.f32 %v1340_v9, %v1340_v9 }
 0x28d   : > { %v1372_v32 = vadd.f32 %v1356_v12, %v1352_v1  ;;  %v1370_v40 = vadd.f32 0.0081, %v1368_v55  ;;  %v1360_v19 = vadd.f32 0.0081, %v1358_v51  ;;  %v1430_v55 = vsel %vm299_vm3, %v2690_v48, 0.0 }
 0x28e   : > { %v1251_v2 = vpop.permute.xlu0 %1250 }
 0x28f   : > { %v1374_v4 = vadd.f32 0.0729, %v1372_v32  ;;  %v1255_v6 = vadd.f32 %v1251_v2, %v1247_v16 }
 0x291   : > { %v1376_v3 = vmul.f32 %v1374_v4, %v1370_v40  ;;  %v1351_v42 = vmul.f32 9.0, %v1255_v6 }
 0x292   : > { %v689_v31 = vpop.xlane.xlu1 %688  ;;  %1088 = vadd.xlane.f32.xlu0 %v2642_v43 }
 0x293   : > { %1742 = vrcp.f32 %v1376_v3  ;;  %v1353_v15 = vsub.f32 %v1351_v42, %v2665_v7  ;;  %v690_v8 = vrot.slane %v689_v31, 4 }
 0x295   : > { %v1373_v39 = vadd.f32 %v1357_v29, %v1353_v15  ;;  %v691_v36 = vadd.f32 %v690_v8, %v689_v31 }
 0x296   : > { %v1325_v14 = vpop.permute.xlu0 %1324 }
 0x297   : > { %v1375_v25 = vadd.f32 0.0729, %v1373_v39  ;;  %v692_v30 = vrot.slane %v691_v36, 2  ;;  %v1330_v46 = vadd.f32 %v1325_v14, %v2619_v28 }
 0x299   : > { %v1743_v17 = vpop.eup %1742  ;;  %v1377_v43 = vmul.f32 %v1375_v25, %v1371_v62  ;;  %v1338_v63 = vadd.f32 %v2683_v38, %v1330_v46  ;;  %v693_v7 = vadd.f32 %v692_v30, %v691_v36  ;;  %v1017_v38 = vadd.f32 %v1016_v18, %v1015_v58 }
 0x29a   : > { %v1380_v37 = vmul.f32 %v1743_v17, %v1376_v3 }
 0x29b   : > { %1744 = vrcp.f32 %v1377_v43  ;;  %v1346_v45 = vmul.f32 9.0, %v1338_v63  ;;  %v694_v54 = vrot.slane %v693_v7, 1 }
 0x29c   : > { %v1382_v11 = vsub.f32 2.0, %v1380_v37 }
 0x29d   : > { %v1348_v26 = vsub.f32 %v1346_v45, %v1340_v9  ;;  %v695_v28 = vadd.f32 %v694_v54, %v693_v7 }
 0x29e   : > { %v1335_v24 = vpop.permute.xlu0 %1334  ;;  %v1384_v12 = vmul.f32 %v1743_v17, %v1382_v11 }
 0x29f   : > { %v1362_v10 = vadd.f32 %v1348_v26, %v1348_v26  ;;  %v1339_v0 = vadd.f32 %v1335_v24, %v1331_v52  ;;  %1661 = vpush %v695_v28 }
 0x2a0   : > { %1663 = vpush %v736_v23 }
 0x2a1   : > { %v1745_v44 = vpop.eup %1744  ;;  %v1364_v1 = vadd.f32 0.0729, %v1362_v10  ;;  %v1347_v35 = vmul.f32 9.0, %v1339_v0  ;;  %1665 = vpush %v1017_v38 }
 0x2a2   : > { %v1381_v41 = vmul.f32 %v1745_v44, %v1377_v43  ;;  %1667 = vpush %v1050_v27 }
 0x2a3   : > { %v1366_v20 = vmul.f32 %v1364_v1, %v1360_v19  ;;  %v1349_v16 = vsub.f32 %v1347_v35, %v2663_v21 }
 0x2a4   : > { %v1383_v61 = vsub.f32 2.0, %v1381_v41 }
 0x2a5   : > { %v1363_v57 = vadd.f32 %v1349_v16, %v1349_v16  ;;  %v1386_v32 = vmul.f32 %v1384_v12, %v1366_v20 }
 0x2a6   : > { %v1424_v33 = vpop.permute.xlu0 %1423  ;;  %v1385_v29 = vmul.f32 %v1745_v44, %v1383_v61 }
 0x2a7   : > { %v1365_v2 = vadd.f32 0.0729, %v1363_v57  ;;  %v1429_v40 = vsel %vm299_vm3, %v1424_v33, 0.0  ;;  %v1388_v4 = vsub.f32 1.0, %v1386_v32 }
 0x2a8   : > { %v1431_v6 = vadd.f32 %v1430_v55, %v1429_v40 }
 0x2a9   : > { %v1367_v50 = vmul.f32 %v1365_v2, %v1361_v22  ;;  %v1390_v3 = vmul.f32 0.5, %v1388_v4 }
 0x2aa   : > { %1432 = vadd.xlane.f32.xlu0 %v1431_v6 }
 0x2ab   : > { %v1387_v42 = vmul.f32 %v1385_v29, %v1367_v50  ;;  %v1392_v34 = vmax.f32 %v1390_v3, 0.0  ;;  %v1517_v50 = vlaneseq }
 0x2ad   : > { %v1389_v21 = vsub.f32 1.0, %v1387_v42  ;;  %v1394_v48 = vmin.f32 %v1392_v34, 1.0  ;;  %v1518_v29 = vshrl.u32 %v1517_v50, 7 }
 0x2af   : > { %v1391_v60 = vmul.f32 0.5, %v1389_v21  ;;  %v1396_v8 = vsel %vm299_vm3, %v1394_v48, 0.0  ;;  %vm1522_vm7 = vcmp.eq.s32.totalorder %v1518_v29, 3  ;;  %vm1521_vm8 = vcmp.eq.s32.totalorder %v1518_v29, 2 }
 0x2b0   : > { %vm1520_vm9 = vcmp.eq.s32.totalorder %v1518_v29, 1  ;;  %vm1519_vm10 = vcmp.eq.s32.totalorder %v1518_v29, 0 }
 0x2b1   : > { %v1393_v31 = vmax.f32 %v1391_v60, 0.0 }
 0x2b3   : > { %v1395_v15 = vmin.f32 %v1393_v31, 1.0 }
 0x2b5   : > { %v1397_v13 = vsel %vm299_vm3, %v1395_v15, 0.0 }
 0x2b6   : > { %v1398_v39 = vadd.f32 %v1397_v13, %v1396_v8 }
 0x2b8   : > { %1399 = vadd.xlane.f32.xlu2 %v1398_v39 }
 0x2ba   : > { %v1469_v36 = vpop.permute.xlu2 %1468 }
 0x2bb   : > { %v1474_v30 = vsel %vm251_vm6, %v1469_v36, 0.0 }
 0x2c2   : > { %v1501_v14 = vpop.permute.xlu2 %1500 }
 0x2c3   : > { %v1505_v58 = vsel %vm305_vm2, %v1501_v14, 0.0 }
 0x2c4   : > { %v1506_v62 = vadd.f32 %v1505_v58, %v1504_v5 }
 0x2c6   : > { %1507 = vadd.xlane.f32.xlu2 %v1506_v62 }
 0x2d0   : > { %s1662_s20 = spop %1661 }
 0x2d1   : > { %s1664_s24 = spop %1663 }
 0x2d2   : > { %s1666_s25 = spop %1665 }
 0x2d3   : > { %s1668_s26 = spop %1667  ;;  %s1019_s5 = sadd.f32 %s1666_s25, %s1658_s17 }
 0x2d4   : > { %s1052_s7 = sadd.f32 %s1668_s26, %s1660_s19  ;;  %s1545_s17 = sshll.u32 %s193_s16, 4  ;;  %s1546_s17 = int_to_ptr.vmem [resolvable:$true] %s1545_s17 }
 0x2d5   : > { %s1547_s19 = sshll.u32 %s1543_s1, 4  ;;  %s1548_s19 = int_to_ptr.hbm [resolvable:$true] %s1547_s19 }
 0x2da   : > { %v1471_v25 = vpop.permute.xlu0 %1470 }
 0x2db   : > { %v1475_v46 = vsel %vm251_vm6, %v1471_v25, 0.0 }
 0x2dc   : > { %v1476_v49 = vadd.f32 %v1475_v46, %v1474_v30 }
 0x2de   : > { %1477 = vadd.xlane.f32.xlu1 %v1476_v49 }
 0x2ed   : > { %v1119_v17 = vpop.xlane.xlu1 %1118 }
 0x2ee   : > { %v1120_v9 = vrot.slane %v1119_v17, 4 }
 0x2f0   : > { %v1121_v43 = vadd.f32 %v1120_v9, %v1119_v17 }
 0x2f2   : > { %v1122_v63 = vrot.slane %v1121_v43, 2 }
 0x2f4   : > { %v1123_v18 = vadd.f32 %v1122_v63, %v1121_v43 }
 0x2f6   : > { %v1124_v45 = vrot.slane %v1123_v18, 1 }
 0x2f8   : > { %v1125_v51 = vadd.f32 %v1124_v45, %v1123_v18 }
 0x305   : > { %v1089_v7 = vpop.xlane.xlu0 %1088 }
 0x306   : > { %v1090_v52 = vrot.slane %v1089_v7, 4 }
 0x308   : > { %v1091_v53 = vadd.f32 %v1090_v52, %v1089_v7 }
 0x30a   : > { %v1092_v56 = vrot.slane %v1091_v53, 2 }
 0x30c   : > { %v1093_v37 = vadd.f32 %v1092_v56, %v1091_v53 }
 0x30e   : > { %v1094_v54 = vrot.slane %v1093_v37, 1 }
 0x310   : > { %v1095_v59 = vadd.f32 %v1094_v54, %v1093_v37 }
 0x312   : > { %1669 = vpush %v1095_v59 }
 0x313   : > { %1671 = vpush %v1125_v51 }
 0x31d   : > { %v1433_v26 = vpop.xlane.xlu0 %1432 }
 0x31e   : > { %v1434_v28 = vrot.slane %v1433_v26, 4 }
 0x320   : > { %v1435_v24 = vadd.f32 %v1434_v28, %v1433_v26 }
 0x322   : > { %v1436_v23 = vrot.slane %v1435_v24, 2 }
 0x324   : > { %v1437_v0 = vadd.f32 %v1436_v23, %v1435_v24 }
 0x326   : > { %v1438_v44 = vrot.slane %v1437_v0, 1 }
 0x328   : > { %v1439_v35 = vadd.f32 %v1438_v44, %v1437_v0 }
 0x32b   : > { %v1400_v11 = vpop.xlane.xlu2 %1399 }
 0x32c   : > { %v1401_v10 = vrot.slane %v1400_v11, 4 }
 0x32e   : > { %v1402_v38 = vadd.f32 %v1401_v10, %v1400_v11 }
 0x330   : > { %v1403_v27 = vrot.slane %v1402_v38, 2 }
 0x332   : > { %v1404_v19 = vadd.f32 %v1403_v27, %v1402_v38 }
 0x334   : > { %v1405_v1 = vrot.slane %v1404_v19, 1 }
 0x336   : > { %v1406_v41 = vadd.f32 %v1405_v1, %v1404_v19 }
 0x338   : > { %1673 = vpush %v1406_v41 }
 0x339   : > { %1675 = vpush %v1439_v35  ;;  %v1508_v47 = vpop.xlane.xlu2 %1507 }
 0x33a   : > { %v1509_v20 = vrot.slane %v1508_v47, 4 }
 0x33c   : > { %v1510_v16 = vadd.f32 %v1509_v20, %v1508_v47 }
 0x33e   : > { %v1511_v12 = vrot.slane %v1510_v16, 2 }
 0x340   : > { %v1512_v32 = vadd.f32 %v1511_v12, %v1510_v16 }
 0x342   : > { %v1513_v2 = vrot.slane %v1512_v32, 1 }
 0x343   : > { %s1670_s27 = spop %1669 }
 0x344   : > { %v1514_v6 = vadd.f32 %v1513_v2, %v1512_v32  ;;  %s1672_s29 = spop %1671  ;;  %s1097_s9 = sadd.f32 %s1670_s27, %s1662_s20 }
 0x345   : > { %s1127_s10 = sadd.f32 %s1672_s29, %s1664_s24 }
 0x351   : > { %v1478_v55 = vpop.xlane.xlu1 %1477 }
 0x352   : > { %v1479_v61 = vrot.slane %v1478_v55, 4 }
 0x354   : > { %v1480_v57 = vadd.f32 %v1479_v61, %v1478_v55 }
 0x356   : > { %v1481_v33 = vrot.slane %v1480_v57, 2 }
 0x358   : > { %v1482_v22 = vadd.f32 %v1481_v33, %v1480_v57 }
 0x35a   : > { %v1483_v40 = vrot.slane %v1482_v22, 1 }
 0x35c   : > { %v1484_v4 = vadd.f32 %v1483_v40, %v1482_v22 }
 0x35e   : > { %1677 = vpush %v1484_v4 }
 0x35f   : > { %1679 = vpush %v1514_v6 }
 0x369   : > { %s1674_s30 = spop %1673 }
 0x36a   : > { %s1676_s8 = spop %1675  ;;  %s1408_s28 = sadd.f32 %s1674_s30, %s1019_s5 }
 0x36b   : > { %s1441_s2 = sadd.f32 %s1676_s8, %s1052_s7 }
 0x36c   : > { %v1529_v31 = vstv %s1408_s28 }
 0x36d   : > { %v1527_v34 = vstv %s1441_s2  ;;  %s1766_s2 = scalar_lea.hbm %s2767_s3, 16 }
 0x38f   : > { %s1678_s21 = spop %1677 }
 0x390   : > { %s1486_s14 = sadd.f32 %s1678_s21, %s1097_s9  ;;  %s1680_s18 = spop %1679 }
 0x391   : > { %s1516_s23 = sadd.f32 %s1680_s18, %s1127_s10  ;;  %s1760_s18 = sshra.s32 %s1548_s19, 4  ;;  %s1761_s18 = int_to_ptr.hbm [resolvable:$true] %s1760_s18 }
 0x392   : > { %v1525_v3 = vstv %s1486_s14  ;;  %s1533_s14 = scalar_lea.sflag [#allocation3], %s2785_s0  ;;  %s1762_s21 = scalar_lea.hbm %s1761_s18, 8 }
 0x393   : > { %v1523_v42 = vstv %s1516_s23  ;;  %p1763_p11 = scmp.ne.s32.totalorder %s1761_s18, %s1762_s21  ;;  %p1767_p0 = scmp.lt.s32.totalorder %s1761_s18, %s2767_s3 }
 0x394   : > { %v1524_v21 = vsel %vm1522_vm7, %v1523_v42, 0.0  ;;  %p1768_p1 = scmp.lt.s32.totalorder %s1766_s2, %s1762_s21 }
 0x395   : > { %v1526_v60 = vsel %vm1521_vm8, %v1525_v3, %v1524_v21  ;;  %p1764_p12 = pnand %p1763_p11, %p1872_p5 }
 0x396   : > { %v1528_v48 = vsel %vm1520_vm9, %v1527_v34, %v1526_v60  ;;  %p1769_p2 = por %p1768_p1, %p1767_p0 }
 0x397   : > { %v1530_v15 = vsel %vm1519_vm10, %v1529_v31, %v1528_v48  ;;  %p1765_p13 = pneg %p1764_p12 }
 0x398   : > { %1531 = vst [vmem:[%s193_s16] sm:$0xff] %v1530_v15 }
 0x399   : > { %p1770_p3 = pnand %p1769_p2, %p1765_p13 }
 0x39b   : > { %1773 = shalt.err (!%p1770_p3)
}
 0x39c   : > { %1681 = dma.vmem_to_hbm [thread:$0]  (%p1872_p5), %s1546_s17, 128, %s1548_s19, %s1533_s14  }
 0x39d PF: > { %p1687_p4 = scmp.ge.s32.totalorder %s1808_s15, 2  ;;  %s1559_s26 = sand.u32 1, %s1796_s12  }
 0x39e   : > { %s1560_s27 = scalar_lea.sflag [#allocation3], %s1559_s26 }
 0x39f   : > { %p1684_p7 = pnand %p1687_p4, %p1876_p6 }
 0x3a1   : > { %p1685_p8 = pneg %p1684_p7 }
 0x3a3   : > { %1791 = dma.done.wait (%p1685_p8), %s1560_s27, 128  }
 0x3a4   : > { %1793 = vsyncadd (%p1685_p8), %s1560_s27, 4294967168  ;;  %s2787_s15 = sld [smem:[#allocation6_spill]]  ;;  %s2790_s12 = smov %s1800_s13 }
 0x3a5   : > { %s2788_s28 = sld [smem:[#allocation5_spill]] }
 0x3a6   : > { %s2789_s14 = sld [smem:[#allocation7_spill]] }
 0x3aa   : > { %p13_p9 = scmp.ge.s32.totalorder %s2787_s15, 4  }
 0x3ab   : > { %s2791_s13 = smov %s2788_s28 }
 0x3ac   :  { %15 = sbr.rel (!%p13_p9) target bundleno = 7 (0x7), region = 77 }
 0x3b1   :  { %1566 = vsyncpa [#allocation3], 1 }
 0x3b2   :  { %1568 = vsyncpa [#allocation3 + $0x1], 1 }

</bundles_post_ra>
